<compile_context>
chip_gen: v6e
topology: v6e:2x2x1
jax: 0.10.0
libtpu: 0.0.40
codegen_flags: <defaults>
</compile_context>

<pallas_src>
import functools
import math

import jax
import jax.numpy as jnp
import numpy as np
from jax.experimental import pallas as pl
from jax.experimental.pallas import tpu as pltpu


def _round_up(x, m):
    return ((x + m - 1) // m) * m


def _logit_attention_kernel(qh_ref, k_ref, v_ref, lk_ref, mask_ref, wt_ref, hsel_ref,
                            out_ref, *, tanh_clipping, softmax_temp):
    f32 = jnp.float32
    qh = qh_ref[...]                       # (TB, H, E)   bf16  MXU operand
    k = k_ref[...]                         # (TB, Np, E)  bf16  MXU operand
    v = v_ref[...]                         # (TB, Np, E)  bf16  MXU operand
    lk = lk_ref[...]                       # (TB, Np, E)  bf16  MXU operand (no f32 upcast)
    masked = mask_ref[...] > 0.5           # (TB, Np)     True == masked / infeasible
    w_t = wt_ref[...]                      # (E, E)       bf16  == W.T  (glimpse = heads @ W.T)
    hsel = hsel_ref[...]                   # (H, E)       f32   1.0 where lane e belongs to head h

    nh, emb = hsel.shape
    hd = emb // nh
    neg_inf = f32(float("-inf"))

    # ---- 1. inner multi-head cross attention (query length == 1), all heads batched ----
    s = jnp.einsum("bhe,bne->bhn", qh, k, preferred_element_type=f32)       # (TB, H, Np)
    s = s * f32(1.0 / math.sqrt(hd))
    s = jnp.where(masked[:, None, :], neg_inf, s)                           # mask_inner=True

    s_max = jnp.max(s, axis=-1, keepdims=True)
    e_s = jnp.exp(s - s_max)
    denom = jnp.sum(e_s, axis=-1, keepdims=True)
    p = (e_s * pl.reciprocal(denom, approx=True)).astype(k.dtype)           # (TB, H, Np) bf16

    o = jnp.einsum("bhn,bne->bhe", p, v, preferred_element_type=f32)        # (TB, H, E)  f32
    heads = jnp.sum(o * hsel[None, :, :], axis=1)                           # (TB, E)     f32

    # ---- 2. output projection on the MXU: glimpse = heads @ W.T ----
    glimpse = jnp.dot(heads.astype(w_t.dtype), w_t,
                      preferred_element_type=f32)                           # (TB, E)     f32

    # ---- 3. compatibility of glimpse with the logit key on the MXU ----
    g3 = glimpse.astype(lk.dtype)[:, None, :]                               # (TB, 1, E)  bf16
    logits = jnp.einsum("bqe,bne->bqn", g3, lk,
                        preferred_element_type=f32)[:, 0, :]                # (TB, Np)    f32
    logits = logits * f32(1.0 / math.sqrt(emb))

    # ---- 4. tanh clipping, logit masking, temperature, log_softmax ----
    if tanh_clipping > 0:
        logits = jnp.tanh(logits) * f32(tanh_clipping / softmax_temp)
    else:
        logits = logits * f32(1.0 / softmax_temp)
    logits = jnp.where(masked, neg_inf, logits)                             # mask_logits=True

    lmax = jnp.max(logits, axis=-1, keepdims=True)
    lse = jnp.log(jnp.sum(jnp.exp(logits - lmax), axis=-1, keepdims=True)) + lmax
    out_ref[...] = logits - lse                                             # lane-dense (TB, Np)


def prepare_logit_attention_inputs(key, value, logit_key, w, num_heads,
                                   block_b=None, stream_dtype=jnp.bfloat16):
    """One-time (per problem instance) preparation of the decode-invariant tensors.

    key/value (B, N, E), logit_key (B, 1, N, E) or (B, N, E), w (E, E) Linear weight.
    In rl4co decoding K/V/logit_key/W are fixed across the rollout, so doing the bf16
    cast + N/batch padding here (instead of every decode step) removes HBM traffic of
    the same order as the kernel itself.
    """
    B, N, E = key.shape
    assert E % num_heads == 0, "embed_dim must be divisible by num_heads"
    itemsize = jnp.dtype(stream_dtype).itemsize
    Np = _round_up(max(N, 1), 128)                  # lane-dense score / output width

    # Batch tile: target ~4 MiB of streamed K/V/logit_key per grid step so the DMA
    # time dwarfs the ~0.35 us per-step pipeline overhead; capped by the batch.
    # (On v7x, Bp//TB >= 2 is also needed for the "parallel" axis to fill both TCs.)
    if block_b is None:
        per_row = 3 * Np * E * itemsize
        tb = max(8, (4 << 20) // max(per_row, 1))
    else:
        tb = max(8, int(block_b))
    TB = min(_round_up(tb, 8), _round_up(B, 8), 512)
    Bp = _round_up(B, TB)

    def pad_stream(x):
        x = x.reshape(B, N, E).astype(stream_dtype)
        return jnp.pad(x, ((0, Bp - B), (0, Np - N), (0, 0)))

    # TODO(synk): for E < 128 a transposed (B, E, Np) layout of key/logit_key would
    # avoid padding the E axis to 128 lanes inside VMEM; kept (N, E) to match the
    # upstream layout.
    hd = E // num_heads
    head_sel = (jnp.arange(E)[None, :] // hd
                == jnp.arange(num_heads)[:, None]).astype(jnp.float32)      # (H, E)

    return {
        "k": pad_stream(key),
        "v": pad_stream(value),
        "lk": pad_stream(logit_key),
        "w_t": jnp.asarray(w).T.astype(stream_dtype),   # glimpse = heads @ W.T
        "head_sel": head_sel,
        "B": B, "N": N, "E": E, "H": num_heads,
        "Bp": Bp, "Np": Np, "TB": TB,
        "stream_dtype": stream_dtype,
    }


def logit_attention_with_cache(query, mask, cache, tanh_clipping=10.0,
                               softmax_temp=1.0, vmem_limit_bytes=None):
    """Per-decode-step forward pass.

    query (B, 1, E) or (B, E); mask (B, N) bool, True == masked.
    Returns (B, N) log-probabilities.
    """
    f32 = jnp.float32
    B, N, E, H = cache["B"], cache["N"], cache["E"], cache["H"]
    Bp, Np, TB = cache["Bp"], cache["Np"], cache["TB"]
    stream_dtype = cache["stream_dtype"]
    head_sel = cache["head_sel"]

    # q pre-expanded into per-head lanes (zeros outside each head's lanes) -> the
    # q.k contraction for ALL heads runs as one batched MXU matmul in the kernel.
    q2 = query.reshape(B, E).astype(f32)
    q_heads = (q2[:, None, :] * head_sel[None, :, :]).astype(stream_dtype)  # (B, H, E)
    q_heads = jnp.pad(q_heads, ((0, Bp - B), (0, 0), (0, 0)))

    # mask as float, 1.0 == masked.  Padded key columns are masked for real rows;
    # padded batch rows stay fully unmasked so their (discarded) softmax is NaN-free.
    mask_f = jnp.ones((Bp, Np), f32)
    mask_f = mask_f.at[:B, :N].set(mask.reshape(B, N).astype(f32))
    if Bp > B:
        mask_f = mask_f.at[B:, :].set(0.0)

    kernel = functools.partial(_logit_attention_kernel,
                               tanh_clipping=float(tanh_clipping),
                               softmax_temp=float(softmax_temp))

    if vmem_limit_bytes is None:
        itemsize = jnp.dtype(stream_dtype).itemsize
        blocks = 2 * (3 * TB * Np * E * itemsize       # k, v, lk (double-buffered)
                      + TB * H * E * itemsize          # q_heads
                      + 2 * TB * Np * 4                # mask + out (f32)
                      + E * E * itemsize               # W.T
                      + H * E * 4)                     # head selector
        interm = (4 * TB * H * Np * 4                  # s / e_s / p / where temporaries
                  + 3 * TB * H * E * 4                 # o / head-merge temporaries
                  + 4 * TB * Np * 4                    # logits / log_softmax temporaries
                  + 4 * TB * E * 4)                    # heads / glimpse temporaries
        vmem_limit_bytes = int(1.5 * (blocks + interm)) + (2 << 20)
    # v7x has only 64 MiB physical VMEM (v5e/v6e: 128 MiB); if this estimate nears
    # that budget, lower block_b when preparing the cache.
    vmem_limit_bytes = min(max(int(vmem_limit_bytes), 32 << 20), 128 << 20)

    out = pl.pallas_call(
        kernel,
        out_shape=jax.ShapeDtypeStruct((Bp, Np), f32),
        grid=(Bp // TB,),
        in_specs=[
            pl.BlockSpec((TB, H, E), lambda b: (b, 0, 0)),     # q_heads
            pl.BlockSpec((TB, Np, E), lambda b: (b, 0, 0)),    # key
            pl.BlockSpec((TB, Np, E), lambda b: (b, 0, 0)),    # value
            pl.BlockSpec((TB, Np, E), lambda b: (b, 0, 0)),    # logit_key
            pl.BlockSpec((TB, Np), lambda b: (b, 0)),          # mask (float, 1 == masked)
            pl.BlockSpec((E, E), lambda b: (0, 0)),            # W.T (bf16)
            pl.BlockSpec((H, E), lambda b: (0, 0)),            # head selector
        ],
        out_specs=pl.BlockSpec((TB, Np), lambda b: (b, 0)),
        compiler_params=pltpu.CompilerParams(
            dimension_semantics=("parallel",),                 # shards batch tiles across TCs
            vmem_limit_bytes=vmem_limit_bytes),
    )(q_heads, cache["k"], cache["v"], cache["lk"], mask_f, cache["w_t"], head_sel)

    return out[:B, :N]


def logit_attention(query, key, value, logit_key, mask, w, num_heads,
                    tanh_clipping=10.0, softmax_temp=1.0,
                    block_b=None, stream_dtype=jnp.bfloat16, vmem_limit_bytes=None):
    """One-shot convenience wrapper (prepare + run).  For decode loops, call
    prepare_logit_attention_inputs() once and logit_attention_with_cache() per step."""
    cache = prepare_logit_attention_inputs(key, value, logit_key, w, num_heads,
                                           block_b=block_b, stream_dtype=stream_dtype)
    return logit_attention_with_cache(query, mask, cache,
                                      tanh_clipping=tanh_clipping,
                                      softmax_temp=softmax_temp,
                                      vmem_limit_bytes=vmem_limit_bytes)


def _reference(query, key, value, logit_key, mask, w, num_heads,
               tanh_clipping=10.0, softmax_temp=1.0, stream_dtype=jnp.bfloat16):
    """Pure-JAX reference mirroring the PyTorch forward semantics.

    All contractions run at HIGHEST f32 precision; `stream_dtype` rounds the
    operands the kernel feeds to the MXU (q/k/v/p/heads/glimpse/W/logit_key) so the
    kernel can be validated against it tightly.  Pass jnp.float32 for pure-f32 math.
    """
    rnd = lambda x: x.astype(stream_dtype).astype(jnp.float32)
    hp = jax.lax.Precision.HIGHEST
    B, _, E = query.shape
    N = key.shape[1]
    hd = E // num_heads
    q = rnd(query).reshape(B, 1, num_heads, hd).transpose(0, 2, 1, 3)
    k = rnd(key).reshape(B, N, num_heads, hd).transpose(0, 2, 1, 3)
    v = rnd(value).reshape(B, N, num_heads, hd).transpose(0, 2, 1, 3)
    s = jnp.einsum("bhqd,bhkd->bhqk", q, k, precision=hp) / math.sqrt(hd)
    s = jnp.where(mask[:, None, None, :], -jnp.inf, s)
    p = rnd(jax.nn.softmax(s, axis=-1))
    heads = jnp.einsum("bhqk,bhkd->bhqd", p, v, precision=hp)
    heads = heads.transpose(0, 2, 1, 3).reshape(B, 1, E)
    glimpse = jnp.einsum("bqf,of->bqo", rnd(heads), rnd(w), precision=hp)
    lk = rnd(logit_key.reshape(B, N, E))
    logits = jnp.einsum("bqe,bne->bqn", rnd(glimpse), lk, precision=hp)[:, 0] / math.sqrt(E)
    if tanh_clipping > 0:
        logits = jnp.tanh(logits) * tanh_clipping
    logits = jnp.where(mask, -jnp.inf, logits)
    return jax.nn.log_softmax(logits / softmax_temp, axis=-1)


if __name__ == "__main__":
    def check(out, mask, ref):
        assert out.shape == mask.shape
        assert not bool(jnp.isnan(out).any()), "Logits contain NaNs"
        # masked actions must be exactly -inf in the log-probabilities
        assert bool(jnp.all(jnp.where(mask, jnp.isneginf(out), True)))
        # feasible log-probs must exponentiate to a proper distribution
        probs = jnp.where(mask, 0.0, jnp.exp(out))
        np.testing.assert_allclose(np.asarray(probs.sum(-1)), 1.0, rtol=1e-3, atol=1e-3)
        # numeric check vs. the module math run at the kernel's operand precision
        # (tolerance covers bf16 streaming + approx softmax reciprocal, amplified by
        #  the tanh_clipping x10 stage)
        np.testing.assert_allclose(np.asarray(out), np.asarray(ref),
                                   rtol=2e-2, atol=2e-2)

    def run_case(case_id, B, N, E, H, block_b):
        root = jax.random.fold_in(jax.random.PRNGKey(0), case_id)
        kq, kk, kv, klk, km, kw, kq2, km2 = jax.random.split(root, 8)
        query = jax.random.normal(kq, (B, 1, E), jnp.float32)
        keyt = jax.random.normal(kk, (B, N, E), jnp.float32)
        value = jax.random.normal(kv, (B, N, E), jnp.float32)
        logit_key = jax.random.normal(klk, (B, 1, N, E), jnp.float32)
        mask = jax.random.bernoulli(km, 0.3, (B, N))
        mask = mask.at[:, 0].set(False)          # keep >= 1 feasible action per row
        bound = 1.0 / math.sqrt(E)               # nn.Linear(E, E, bias=False) init range
        w = jax.random.uniform(kw, (E, E), jnp.float32, minval=-bound, maxval=bound)

        # decode-invariant tensors are prepared once ...
        cache = prepare_logit_attention_inputs(keyt, value, logit_key, w,
                                               num_heads=H, block_b=block_b)

        # ... and reused across decode steps (only query / mask change per step).
        out = jax.block_until_ready(logit_attention_with_cache(query, mask, cache))
        check(out, mask, _reference(query, keyt, value, logit_key, mask, w, H))

        query2 = jax.random.normal(kq2, (B, 1, E), jnp.float32)
        mask2 = jax.random.bernoulli(km2, 0.5, (B, N)).at[:, 0].set(False)
        out2 = jax.block_until_ready(logit_attention_with_cache(query2, mask2, cache))
        check(out2, mask2, _reference(query2, keyt, value, logit_key, mask2, w, H))

    run_case(case_id=0, B=2, N=8, E=32, H=4, block_b=None)    # tiny smoke shape, auto TB
    run_case(case_id=1, B=20, N=50, E=64, H=8, block_b=32)    # padding + explicit block_b
    print("KERNEL_OK")
</pallas_src>

<mosaic_0001>
module attributes {stable_mosaic.version = 11 : i64} {
  func.func @_logit_attention_kernel(%arg0: i32, %arg1: memref<8x4x32xbf16, #tpu.memory_space<vmem>>, %arg2: memref<8x128x32xbf16, #tpu.memory_space<vmem>>, %arg3: memref<8x128x32xbf16, #tpu.memory_space<vmem>>, %arg4: memref<8x128x32xbf16, #tpu.memory_space<vmem>>, %arg5: memref<8x128xf32, #tpu.memory_space<vmem>>, %arg6: memref<32x32xbf16, #tpu.memory_space<vmem>>, %arg7: memref<4x32xf32, #tpu.memory_space<vmem>>, %arg8: memref<8x128xf32, #tpu.memory_space<vmem>>) attributes {dimension_semantics = [#tpu.dimension_semantics<parallel>], iteration_bounds = array<i64: 1>, scalar_prefetch = 0 : i64, scratch_operands = 0 : i64, tpu.core_type = #tpu.core_type<tc>, window_params = [{transform_indices = @transform_0, window_bounds = array<i64: 8, 4, 32>}, {transform_indices = @transform_1, window_bounds = array<i64: 8, 128, 32>}, {transform_indices = @transform_2, window_bounds = array<i64: 8, 128, 32>}, {transform_indices = @transform_3, window_bounds = array<i64: 8, 128, 32>}, {transform_indices = @transform_4, window_bounds = array<i64: 8, 128>}, {pipeline_mode = #tpu.pipeline_mode<synchronous>, transform_indices = @transform_5, window_bounds = array<i64: 32, 32>}, {pipeline_mode = #tpu.pipeline_mode<synchronous>, transform_indices = @transform_6, window_bounds = array<i64: 4, 32>}, {transform_indices = @transform_7, window_bounds = array<i64: 8, 128>}]} {
    %c0 = arith.constant 0 : index
    %c0_0 = arith.constant 0 : index
    %c0_1 = arith.constant 0 : index
    %0 = vector.load %arg1[%c0, %c0_0, %c0_1] : memref<8x4x32xbf16, #tpu.memory_space<vmem>>, vector<8x4x32xbf16>
    %c0_2 = arith.constant 0 : index
    %c0_3 = arith.constant 0 : index
    %c0_4 = arith.constant 0 : index
    %1 = vector.load %arg2[%c0_2, %c0_3, %c0_4] : memref<8x128x32xbf16, #tpu.memory_space<vmem>>, vector<8x128x32xbf16>
    %c0_5 = arith.constant 0 : index
    %c0_6 = arith.constant 0 : index
    %c0_7 = arith.constant 0 : index
    %2 = vector.load %arg3[%c0_5, %c0_6, %c0_7] : memref<8x128x32xbf16, #tpu.memory_space<vmem>>, vector<8x128x32xbf16>
    %c0_8 = arith.constant 0 : index
    %c0_9 = arith.constant 0 : index
    %c0_10 = arith.constant 0 : index
    %3 = vector.load %arg4[%c0_8, %c0_9, %c0_10] : memref<8x128x32xbf16, #tpu.memory_space<vmem>>, vector<8x128x32xbf16>
    %c0_11 = arith.constant 0 : index
    %c0_12 = arith.constant 0 : index
    %4 = vector.load %arg5[%c0_11, %c0_12] : memref<8x128xf32, #tpu.memory_space<vmem>>, vector<8x128xf32>
    %cst = arith.constant 5.000000e-01 : f32
    %5 = vector.broadcast %cst : f32 to vector<8x128xf32>
    %6 = arith.cmpf ogt, %4, %5 : vector<8x128xf32>
    %c0_13 = arith.constant 0 : index
    %c0_14 = arith.constant 0 : index
    %7 = vector.load %arg6[%c0_13, %c0_14] : memref<32x32xbf16, #tpu.memory_space<vmem>>, vector<32x32xbf16>
    %c0_15 = arith.constant 0 : index
    %c0_16 = arith.constant 0 : index
    %8 = vector.load %arg7[%c0_15, %c0_16] : memref<4x32xf32, #tpu.memory_space<vmem>>, vector<4x32xf32>
    "tpu.trace_start"() <{level = 10 : i32, message = "bhe,bne->bhn"}> : () -> ()
    %cst_17 = arith.constant dense<0.000000e+00> : vector<8x4x128xf32>
    %9 = tpu.matmul %0, %1, %cst_17 {dimension_numbers = #tpu.dot_dimension_numbers<[2], [2], [1], [1], [0, 0, 0, 1, 1, 1], [0], [0]>} : vector<8x4x32xbf16>, vector<8x128x32xbf16>, vector<8x4x128xf32> -> vector<8x4x128xf32>
    "tpu.trace_stop"() : () -> ()
    %cst_18 = arith.constant 0.353553385 : f32
    %10 = vector.broadcast %cst_18 : f32 to vector<8x4x128xf32>
    %11 = arith.mulf %9, %10 : vector<8x4x128xf32>
    %12 = vector.shape_cast %6 : vector<8x128xi1> to vector<8x1x128xi1>
    %cst_19 = arith.constant 0xFF800000 : f32
    %13 = vector.shape_cast %12 : vector<8x1x128xi1> to vector<8x1x128xi1>
    %14 = vector.broadcast %13 : vector<8x1x128xi1> to vector<8x4x128xi1>
    %15 = vector.broadcast %cst_19 : f32 to vector<8x4x128xf32>
    %16 = arith.select %14, %15, %11 : vector<8x4x128xi1>, vector<8x4x128xf32>
    %cst_20 = arith.constant dense<0xFF800000> : vector<8x4xf32>
    %17 = vector.multi_reduction <maximumf>, %16, %cst_20 [2] : vector<8x4x128xf32> to vector<8x4xf32>
    %18 = vector.shape_cast %17 : vector<8x4xf32> to vector<8x4x1xf32>
    %19 = vector.broadcast %18 : vector<8x4x1xf32> to vector<8x4x128xf32>
    %20 = arith.subf %16, %19 : vector<8x4x128xf32>
    %21 = math.exp %20 : vector<8x4x128xf32>
    %cst_21 = arith.constant dense<0.000000e+00> : vector<8x4xf32>
    %22 = vector.multi_reduction <add>, %21, %cst_21 [2] : vector<8x4x128xf32> to vector<8x4xf32>
    %23 = vector.shape_cast %22 : vector<8x4xf32> to vector<8x4x1xf32>
    %24 = tpu.reciprocal %23 {approx = true} : vector<8x4x1xf32> -> vector<8x4x1xf32>
    %25 = vector.broadcast %24 : vector<8x4x1xf32> to vector<8x4x128xf32>
    %26 = arith.mulf %21, %25 : vector<8x4x128xf32>
    %27 = arith.truncf %26 : vector<8x4x128xf32> to vector<8x4x128xbf16>
    "tpu.trace_start"() <{level = 10 : i32, message = "bhn,bne->bhe"}> : () -> ()
    %cst_22 = arith.constant dense<0.000000e+00> : vector<8x4x32xf32>
    %28 = tpu.matmul %27, %2, %cst_22 {dimension_numbers = #tpu.dot_dimension_numbers<[2], [1], [1], [2], [0, 0, 0, 1, 1, 2], [0], [0]>} : vector<8x4x128xbf16>, vector<8x128x32xbf16>, vector<8x4x32xf32> -> vector<8x4x32xf32>
    "tpu.trace_stop"() : () -> ()
    %29 = vector.shape_cast %8 : vector<4x32xf32> to vector<1x4x32xf32>
    %30 = vector.broadcast %29 : vector<1x4x32xf32> to vector<8x4x32xf32>
    %31 = arith.mulf %28, %30 : vector<8x4x32xf32>
    %cst_23 = arith.constant dense<0.000000e+00> : vector<8x32xf32>
    %32 = vector.multi_reduction <add>, %31, %cst_23 [1] : vector<8x4x32xf32> to vector<8x32xf32>
    %33 = arith.truncf %32 : vector<8x32xf32> to vector<8x32xbf16>
    %cst_24 = arith.constant dense<0.000000e+00> : vector<8x32xf32>
    %34 = tpu.matmul %33, %7, %cst_24 {dimension_numbers = #tpu.dot_dimension_numbers<[1], [0], [0], [1], [0, 0, 1, 1], [], []>} : vector<8x32xbf16>, vector<32x32xbf16>, vector<8x32xf32> -> vector<8x32xf32>
    %35 = arith.truncf %34 : vector<8x32xf32> to vector<8x32xbf16>
    %36 = vector.shape_cast %35 : vector<8x32xbf16> to vector<8x1x32xbf16>
    "tpu.trace_start"() <{level = 10 : i32, message = "bqe,bne->bqn"}> : () -> ()
    %cst_25 = arith.constant dense<0.000000e+00> : vector<8x1x128xf32>
    %37 = tpu.matmul %36, %3, %cst_25 {dimension_numbers = #tpu.dot_dimension_numbers<[2], [2], [1], [1], [0, 0, 0, 1, 1, 1], [0], [0]>} : vector<8x1x32xbf16>, vector<8x128x32xbf16>, vector<8x1x128xf32> -> vector<8x1x128xf32>
    "tpu.trace_stop"() : () -> ()
    %38 = vector.shape_cast %37 : vector<8x1x128xf32> to vector<8x128xf32>
    %cst_26 = arith.constant 0.176776692 : f32
    %39 = vector.broadcast %cst_26 : f32 to vector<8x128xf32>
    %40 = arith.mulf %38, %39 : vector<8x128xf32>
    %41 = math.tanh %40 : vector<8x128xf32>
    %cst_27 = arith.constant 1.000000e+01 : f32
    %42 = vector.broadcast %cst_27 : f32 to vector<8x128xf32>
    %43 = arith.mulf %41, %42 : vector<8x128xf32>
    %cst_28 = arith.constant 0xFF800000 : f32
    %44 = vector.broadcast %cst_28 : f32 to vector<8x128xf32>
    %45 = arith.select %6, %44, %43 : vector<8x128xi1>, vector<8x128xf32>
    %cst_29 = arith.constant dense<0xFF800000> : vector<8xf32>
    %46 = vector.multi_reduction <maximumf>, %45, %cst_29 [1] : vector<8x128xf32> to vector<8xf32>
    %47 = vector.shape_cast %46 : vector<8xf32> to vector<8x1xf32>
    %48 = vector.broadcast %47 : vector<8x1xf32> to vector<8x128xf32>
    %49 = arith.subf %45, %48 : vector<8x128xf32>
    %50 = math.exp %49 : vector<8x128xf32>
    %cst_30 = arith.constant dense<0.000000e+00> : vector<8xf32>
    %51 = vector.multi_reduction <add>, %50, %cst_30 [1] : vector<8x128xf32> to vector<8xf32>
    %52 = vector.shape_cast %51 : vector<8xf32> to vector<8x1xf32>
    %53 = math.log %52 : vector<8x1xf32>
    %54 = arith.addf %53, %47 : vector<8x1xf32>
    %55 = vector.broadcast %54 : vector<8x1xf32> to vector<8x128xf32>
    %56 = arith.subf %45, %55 : vector<8x128xf32>
    %c0_31 = arith.constant 0 : index
    %c0_32 = arith.constant 0 : index
    %57 = vector.load %arg8[%c0_31, %c0_32] : memref<8x128xf32, #tpu.memory_space<vmem>>, vector<8x128xf32>
    tpu.vector_store %arg8[%c0_31, %c0_32], %56 {strides = array<i32>} : memref<8x128xf32, #tpu.memory_space<vmem>>, vector<8x128xf32>,
    return
  }
  func.func @transform_0(%arg0: i32) -> (i32, i32, i32) {
    %c0_i32 = arith.constant 0 : i32
    %c0_i32_0 = arith.constant 0 : i32
    %c0_i32_1 = arith.constant 0 : i32
    return %arg0, %c0_i32, %c0_i32_0 : i32, i32, i32
  }
  func.func @transform_1(%arg0: i32) -> (i32, i32, i32) {
    %c0_i32 = arith.constant 0 : i32
    %c0_i32_0 = arith.constant 0 : i32
    %c0_i32_1 = arith.constant 0 : i32
    return %arg0, %c0_i32, %c0_i32_0 : i32, i32, i32
  }
  func.func @transform_2(%arg0: i32) -> (i32, i32, i32) {
    %c0_i32 = arith.constant 0 : i32
    %c0_i32_0 = arith.constant 0 : i32
    %c0_i32_1 = arith.constant 0 : i32
    return %arg0, %c0_i32, %c0_i32_0 : i32, i32, i32
  }
  func.func @transform_3(%arg0: i32) -> (i32, i32, i32) {
    %c0_i32 = arith.constant 0 : i32
    %c0_i32_0 = arith.constant 0 : i32
    %c0_i32_1 = arith.constant 0 : i32
    return %arg0, %c0_i32, %c0_i32_0 : i32, i32, i32
  }
  func.func @transform_4(%arg0: i32) -> (i32, i32) {
    %c0_i32 = arith.constant 0 : i32
    %c0_i32_0 = arith.constant 0 : i32
    return %arg0, %c0_i32 : i32, i32
  }
  func.func @transform_5(%arg0: i32) -> (i32, i32) {
    %c0_i32 = arith.constant 0 : i32
    %c0_i32_0 = arith.constant 0 : i32
    %c0_i32_1 = arith.constant 0 : i32
    return %c0_i32, %c0_i32_0 : i32, i32
  }
  func.func @transform_6(%arg0: i32) -> (i32, i32) {
    %c0_i32 = arith.constant 0 : i32
    %c0_i32_0 = arith.constant 0 : i32
    %c0_i32_1 = arith.constant 0 : i32
    return %c0_i32, %c0_i32_0 : i32, i32
  }
  func.func @transform_7(%arg0: i32) -> (i32, i32) {
    %c0_i32 = arith.constant 0 : i32
    %c0_i32_0 = arith.constant 0 : i32
    return %arg0, %c0_i32 : i32, i32
  }
}

</mosaic_0001>

<bundles_post_ra>
// kernel: tpu_custom_call.1
= control target key start
LH: loop header
LB: loop body
LE: loop exit
PB: predicated region body
PF: predicated region fallthrough
CT: control target
= control target key end

     0   :  { %v4565_v1 = vmov 0.0   ;;  %vm467_vm0 = vcmask 261120   ;;  %vm4566_vm1 = vmmov 0   ;;  %s5808_s0 = inlined_call_operand.vmem [shape: bf16[8,4,32], index: 0, kind: input, shape index: {}]   ;;  %s5809_s1 = inlined_call_operand.vmem [shape: bf16[8,128,32], index: 1, kind: input, shape index: {}]   ;;  %s5810_s2 = inlined_call_operand.vmem [shape: bf16[8,128,32], index: 2, kind: input, shape index: {}]   ;;  %s5811_s3 = inlined_call_operand.vmem [shape: bf16[8,128,32], index: 3, kind: input, shape index: {}]   ;;  %s5812_s4 = inlined_call_operand.vmem [shape: f32[8,128], index: 4, kind: input, shape index: {}]   ;;  %s5813_s5 = inlined_call_operand.vmem [shape: bf16[32,32], index: 5, kind: input, shape index: {}]   ;;  %s5814_s6 = inlined_call_operand.vmem [shape: f32[4,32], index: 6, kind: input, shape index: {}]   ;;  %s5815_s7 = inlined_call_operand.hbm [shape: f32[8,128], index: 7, kind: output, shape index: {}]  }
   0x1   :  { %v4297_v0 = vld [vmem:[%s5809_s1 + $0x38] sm:$0xff]   ;;  %3804 = vmatprep.subr.bf16.mxu0 %v4565_v1  ;;  %3824 = vmatprep.subr.bf16.mxu1 %v4565_v1  ;;  %v4299_v5 = vld [vmem:[%s5809_s1 + $0x30] sm:$0xff]   ;;  %v4301_v9 = vld [vmem:[%s5809_s1 + $0x28] sm:$0xff]  }
   0x2   :  { %v4298_v2 = vld [vmem:[%s5809_s1 + $0x78] sm:$0xff]   ;;  %v493_v3 = vsel %vm467_vm0, %v4297_v0, 0  ;;  %v4300_v6 = vld [vmem:[%s5809_s1 + $0x70] sm:$0xff]   ;;  %v490_v7 = vsel %vm467_vm0, %v4299_v5, 0  ;;  %v4302_v10 = vld [vmem:[%s5809_s1 + $0x68] sm:$0xff]   ;;  %v487_v11 = vsel %vm467_vm0, %v4301_v9, 0  ;;  %3820 = vmatprep.mubr.msk.bf16.mxu0 %vm4566_vm1, %v4565_v1  ;;  %3840 = vmatprep.mubr.msk.bf16.mxu1 %vm4566_vm1, %v4565_v1 }
   0x3   :  { %3805 = vmatpush3.bf16.xpose.msra.mxu0 %v493_v3  ;;  %v600_v4 = vsel %vm467_vm0, %v4298_v2, 0  ;;  %v597_v8 = vsel %vm467_vm0, %v4300_v6, 0  ;;  %v594_v12 = vsel %vm467_vm0, %v4302_v10, 0  ;;  %v4303_v13 = vld [vmem:[%s5809_s1 + $0x20] sm:$0xff]   ;;  %v4305_v17 = vld [vmem:[%s5809_s1 + $0x18] sm:$0xff]   ;;  %v4307_v21 = vld [vmem:[%s5809_s1 + $0x10] sm:$0xff]  }
   0x4   :  { %3825 = vmatpush3.bf16.xpose.msra.mxu1 %v600_v4  ;;  %3806 = vmatprep.subr.bf16.mxu0 %v4565_v1  ;;  %v4304_v14 = vld [vmem:[%s5809_s1 + $0x60] sm:$0xff]   ;;  %v484_v15 = vsel %vm467_vm0, %v4303_v13, 0  ;;  %v4306_v18 = vld [vmem:[%s5809_s1 + $0x58] sm:$0xff]   ;;  %v481_v19 = vsel %vm467_vm0, %v4305_v17, 0  ;;  %v4308_v22 = vld [vmem:[%s5809_s1 + $0x50] sm:$0xff]   ;;  %v478_v23 = vsel %vm467_vm0, %v4307_v21, 0 }
   0x5   :  { %3826 = vmatprep.subr.bf16.mxu1 %v4565_v1  ;;  %v591_v16 = vsel %vm467_vm0, %v4304_v14, 0  ;;  %v588_v20 = vsel %vm467_vm0, %v4306_v18, 0  ;;  %v585_v24 = vsel %vm467_vm0, %v4308_v22, 0  ;;  %v4309_v25 = vld [vmem:[%s5809_s1 + $0x8] sm:$0xff]   ;;  %v4311_v29 = vld [vmem:[%s5809_s1] sm:$0xff]   ;;  %v4313_v32 = vld [vmem:[%s5809_s1 + $0xb8] sm:$0xff]  }
   0x6   :  { %v4310_v26 = vld [vmem:[%s5809_s1 + $0x48] sm:$0xff]   ;;  %v475_v27 = vsel %vm467_vm0, %v4309_v25, 0  ;;  %v4312_v30 = vld [vmem:[%s5809_s1 + $0x40] sm:$0xff]   ;;  %v472_v31 = vsel %vm467_vm0, %v4311_v29, 0  ;;  %v707_v34 = vsel %vm467_vm0, %v4313_v32, 0  ;;  %v4314_v35 = vld [vmem:[%s5809_s1 + $0xf8] sm:$0xff]  }
   0x7   :  { %v582_v28 = vsel %vm467_vm0, %v4310_v26, 0  ;;  %v579_v33 = vsel %vm467_vm0, %v4312_v30, 0  ;;  %v28_v36 = vld [vmem:[%s5808_s0] sm:$0x3]  ;;  %v29_v37 = vld [vmem:[%s5808_s0 + $0x2] sm:$0x3] }
   0x8   :  { %v814_v38 = vsel %vm467_vm0, %v4314_v35, 0  ;;  %v4315_v39 = vld [vmem:[%s5809_s1 + $0xb0] sm:$0xff]   ;;  %v4317_v43 = vld [vmem:[%s5809_s1 + $0xa8] sm:$0xff]   ;;  %v4319_v47 = vld [vmem:[%s5809_s1 + $0xa0] sm:$0xff]  }
   0x9   :  { %v4316_v40 = vld [vmem:[%s5809_s1 + $0xf0] sm:$0xff]   ;;  %v704_v41 = vsel %vm467_vm0, %v4315_v39, 0  ;;  %v4318_v44 = vld [vmem:[%s5809_s1 + $0xe8] sm:$0xff]   ;;  %v701_v45 = vsel %vm467_vm0, %v4317_v43, 0  ;;  %v4320_v48 = vld [vmem:[%s5809_s1 + $0xe0] sm:$0xff]   ;;  %v698_v49 = vsel %vm467_vm0, %v4319_v47, 0 }
   0xa   :  { %v811_v42 = vsel %vm467_vm0, %v4316_v40, 0  ;;  %v808_v46 = vsel %vm467_vm0, %v4318_v44, 0  ;;  %v805_v50 = vsel %vm467_vm0, %v4320_v48, 0  ;;  %v4321_v51 = vld [vmem:[%s5809_s1 + $0x98] sm:$0xff]   ;;  %v4323_v55 = vld [vmem:[%s5809_s1 + $0x90] sm:$0xff]   ;;  %v4325_v59 = vld [vmem:[%s5809_s1 + $0x88] sm:$0xff]  }
   0xb   :  { %3807 = vmatpush3.bf16.xpose.msra.mxu0 %v490_v7  ;;  %v4322_v52 = vld [vmem:[%s5809_s1 + $0xd8] sm:$0xff]   ;;  %v695_v53 = vsel %vm467_vm0, %v4321_v51, 0  ;;  %v4324_v56 = vld [vmem:[%s5809_s1 + $0xd0] sm:$0xff]   ;;  %v692_v57 = vsel %vm467_vm0, %v4323_v55, 0  ;;  %v4326_v60 = vld [vmem:[%s5809_s1 + $0xc8] sm:$0xff]   ;;  %v689_v61 = vsel %vm467_vm0, %v4325_v59, 0 }
   0xc   :  { %3827 = vmatpush3.bf16.xpose.msra.mxu1 %v597_v8  ;;  %3808 = vmatprep.subr.bf16.mxu0 %v4565_v1  ;;  %v802_v54 = vsel %vm467_vm0, %v4322_v52, 0  ;;  %v799_v58 = vsel %vm467_vm0, %v4324_v56, 0  ;;  %v796_v62 = vsel %vm467_vm0, %v4326_v60, 0  ;;  %v4327_v63 = vld [vmem:[%s5809_s1 + $0x80] sm:$0xff]   ;;  %v4329_v3 = vld [vmem:[%s5809_s1 + $0x138] sm:$0xff]   ;;  %v4331_v9 = vld [vmem:[%s5809_s1 + $0x130] sm:$0xff]  }
   0xd   :  { %3828 = vmatprep.subr.bf16.mxu1 %v4565_v1  ;;  %v4328_v0 = vld [vmem:[%s5809_s1 + $0xc0] sm:$0xff]   ;;  %v686_v2 = vsel %vm467_vm0, %v4327_v63, 0  ;;  %v921_v5 = vsel %vm467_vm0, %v4329_v3, 0  ;;  %v4330_v6 = vld [vmem:[%s5809_s1 + $0x178] sm:$0xff]   ;;  %v4332_v10 = vld [vmem:[%s5809_s1 + $0x170] sm:$0xff]   ;;  %v918_v18 = vsel %vm467_vm0, %v4331_v9, 0 }
   0xe   :  { %v793_v4 = vsel %vm467_vm0, %v4328_v0, 0  ;;  %v30_v7 = vld [vmem:[%s5808_s0 + $0x4] sm:$0x3]  ;;  %v31_v8 = vld [vmem:[%s5808_s0 + $0x6] sm:$0x3]  ;;  %v4334_v13 = vld [vmem:[%s5809_s1 + $0x168] sm:$0xff]  }
   0xf   :  { %v4335_v14 = vld [vmem:[%s5809_s1 + $0x120] sm:$0xff]   ;;  %v4338_v17 = vld [vmem:[%s5809_s1 + $0x158] sm:$0xff]   ;;  %v1022_v21 = vsel %vm467_vm0, %v4334_v13, 0  ;;  %v4339_v26 = vld [vmem:[%s5809_s1 + $0x110] sm:$0xff]  }
  0x10   :  { %v912_v22 = vsel %vm467_vm0, %v4335_v14, 0  ;;  %v1016_v25 = vsel %vm467_vm0, %v4338_v17, 0 }
  0x13   :  { %3809 = vmatpush3.bf16.xpose.msra.mxu0 %v487_v11  ;;  %v4333_v11 = vld [vmem:[%s5809_s1 + $0x128] sm:$0xff]  }
  0x14   :  { %3829 = vmatpush3.bf16.xpose.msra.mxu1 %v594_v12  ;;  %3810 = vmatprep.subr.bf16.mxu0 %v4565_v1  ;;  %v1028_v12 = vsel %vm467_vm0, %v4330_v6, 0 }
  0x15   :  { %3830 = vmatprep.subr.bf16.mxu1 %v4565_v1 }
  0x1b   :  { %3811 = vmatpush3.bf16.xpose.msra.mxu0 %v484_v15  ;;  %v4336_v15 = vld [vmem:[%s5809_s1 + $0x160] sm:$0xff]  }
  0x1c   :  { %3831 = vmatpush3.bf16.xpose.msra.mxu1 %v591_v16  ;;  %3812 = vmatprep.subr.bf16.mxu0 %v4565_v1  ;;  %v4337_v16 = vld [vmem:[%s5809_s1 + $0x118] sm:$0xff]  }
  0x1d   :  { %3832 = vmatprep.subr.bf16.mxu1 %v4565_v1 }
  0x23   :  { %3813 = vmatpush3.bf16.xpose.msra.mxu0 %v481_v19  ;;  %v1025_v19 = vsel %vm467_vm0, %v4332_v10, 0 }
  0x24   :  { %3833 = vmatpush3.bf16.xpose.msra.mxu1 %v588_v20  ;;  %3814 = vmatprep.subr.bf16.mxu0 %v4565_v1  ;;  %v915_v20 = vsel %vm467_vm0, %v4333_v11, 0 }
  0x25   :  { %3834 = vmatprep.subr.bf16.mxu1 %v4565_v1 }
  0x2b   :  { %3815 = vmatpush3.bf16.xpose.msra.mxu0 %v478_v23  ;;  %v1019_v23 = vsel %vm467_vm0, %v4336_v15, 0 }
  0x2c   :  { %3835 = vmatpush3.bf16.xpose.msra.mxu1 %v585_v24  ;;  %3816 = vmatprep.subr.bf16.mxu0 %v4565_v1  ;;  %v909_v24 = vsel %vm467_vm0, %v4337_v16, 0 }
  0x2d   :  { %3836 = vmatprep.subr.bf16.mxu1 %v4565_v1 }
  0x33   :  { %3817 = vmatpush3.bf16.xpose.msra.mxu0 %v475_v27 }
  0x34   :  { %3837 = vmatpush3.bf16.xpose.msra.mxu1 %v582_v28  ;;  %3818 = vmatprep.subr.bf16.mxu0 %v4565_v1 }
  0x35   :  { %3838 = vmatprep.subr.bf16.mxu1 %v4565_v1 }
  0x3b   :  { %3819 = vmatpush3.bf16.xpose.msra.mxu0 %v472_v31 }
  0x3c   :  { %3839 = vmatpush3.bf16.xpose.msra.mxu1 %v579_v33  ;;  %3844 = vmatprep.subr.bf16.mxu0 %v4565_v1 }
  0x3d   :  { %3864 = vmatprep.subr.bf16.mxu1 %v4565_v1 }
  0x42   :  { %3821 = vmatmul.mubr.msk.bf16.vlgmr.msra.gmra.mxu0 %vm467_vm0, %v28_v36 }
  0x43   :  { %3841 = vmatmul.mubr.msk.bf16.vlgmr.msra.gmra.mxu1 %vm467_vm0, %v29_v37  ;;  %3845 = vmatpush3.bf16.xpose.msra.mxu0 %v707_v34 }
  0x44   :  { %3865 = vmatpush3.bf16.xpose.msra.mxu1 %v814_v38  ;;  %3846 = vmatprep.subr.bf16.mxu0 %v4565_v1 }
  0x45   :  { %3866 = vmatprep.subr.bf16.mxu1 %v4565_v1  ;;  %3860 = vmatprep.mubr.msk.bf16.mxu0 %vm4566_vm1, %v4565_v1 }
  0x46   :  { %3880 = vmatprep.mubr.msk.bf16.mxu1 %vm4566_vm1, %v4565_v1 }
  0x4b   :  { %3847 = vmatpush3.bf16.xpose.msra.mxu0 %v704_v41 }
  0x4c   :  { %3867 = vmatpush3.bf16.xpose.msra.mxu1 %v811_v42  ;;  %3848 = vmatprep.subr.bf16.mxu0 %v4565_v1 }
  0x4d   :  { %3868 = vmatprep.subr.bf16.mxu1 %v4565_v1 }
  0x53   :  { %3849 = vmatpush3.bf16.xpose.msra.mxu0 %v701_v45 }
  0x54   :  { %3869 = vmatpush3.bf16.xpose.msra.mxu1 %v808_v46  ;;  %3850 = vmatprep.subr.bf16.mxu0 %v4565_v1 }
  0x55   :  { %3870 = vmatprep.subr.bf16.mxu1 %v4565_v1 }
  0x5b   :  { %3851 = vmatpush3.bf16.xpose.msra.mxu0 %v698_v49 }
  0x5c   :  { %3871 = vmatpush3.bf16.xpose.msra.mxu1 %v805_v50  ;;  %3852 = vmatprep.subr.bf16.mxu0 %v4565_v1 }
  0x5d   :  { %3872 = vmatprep.subr.bf16.mxu1 %v4565_v1 }
  0x63   :  { %3853 = vmatpush3.bf16.xpose.msra.mxu0 %v695_v53 }
  0x64   :  { %3873 = vmatpush3.bf16.xpose.msra.mxu1 %v802_v54  ;;  %3854 = vmatprep.subr.bf16.mxu0 %v4565_v1 }
  0x65   :  { %3874 = vmatprep.subr.bf16.mxu1 %v4565_v1 }
  0x6b   :  { %3855 = vmatpush3.bf16.xpose.msra.mxu0 %v692_v57 }
  0x6c   :  { %3875 = vmatpush3.bf16.xpose.msra.mxu1 %v799_v58  ;;  %3856 = vmatprep.subr.bf16.mxu0 %v4565_v1 }
  0x6d   :  { %3876 = vmatprep.subr.bf16.mxu1 %v4565_v1 }
  0x73   :  { %3857 = vmatpush3.bf16.xpose.msra.mxu0 %v689_v61 }
  0x74   :  { %3877 = vmatpush3.bf16.xpose.msra.mxu1 %v796_v62  ;;  %3858 = vmatprep.subr.bf16.mxu0 %v4565_v1 }
  0x75   :  { %3878 = vmatprep.subr.bf16.mxu1 %v4565_v1 }
  0x7b   :  { %3859 = vmatpush3.bf16.xpose.msra.mxu0 %v686_v2 }
  0x7c   :  { %3879 = vmatpush3.bf16.xpose.msra.mxu1 %v793_v4  ;;  %3884 = vmatprep.subr.bf16.mxu0 %v4565_v1 }
  0x7d   :  { %3904 = vmatprep.subr.bf16.mxu1 %v4565_v1 }
  0x82   :  { %3861 = vmatmul.mubr.msk.bf16.vlgmr.msra.gmra.mxu0 %vm467_vm0, %v30_v7 }
  0x83   :  { %3881 = vmatmul.mubr.msk.bf16.vlgmr.msra.gmra.mxu1 %vm467_vm0, %v31_v8  ;;  %3885 = vmatpush3.bf16.xpose.msra.mxu0 %v921_v5 }
  0x84   :  { %3905 = vmatpush3.bf16.xpose.msra.mxu1 %v1028_v12  ;;  %3886 = vmatprep.subr.bf16.mxu0 %v4565_v1 }
  0x85   :  { %3906 = vmatprep.subr.bf16.mxu1 %v4565_v1  ;;  %3900 = vmatprep.mubr.msk.bf16.mxu0 %vm4566_vm1, %v4565_v1 }
  0x86   :  { %3920 = vmatprep.mubr.msk.bf16.mxu1 %vm4566_vm1, %v4565_v1 }
  0x8b   :  { %3887 = vmatpush3.bf16.xpose.msra.mxu0 %v918_v18 }
  0x8c   :  { %3907 = vmatpush3.bf16.xpose.msra.mxu1 %v1025_v19  ;;  %3888 = vmatprep.subr.bf16.mxu0 %v4565_v1 }
  0x8d   :  { %3908 = vmatprep.subr.bf16.mxu1 %v4565_v1 }
  0x93   :  { %3889 = vmatpush3.bf16.xpose.msra.mxu0 %v915_v20 }
  0x94   :  { %3909 = vmatpush3.bf16.xpose.msra.mxu1 %v1022_v21  ;;  %3890 = vmatprep.subr.bf16.mxu0 %v4565_v1 }
  0x95   :  { %3910 = vmatprep.subr.bf16.mxu1 %v4565_v1 }
  0x9b   :  { %3891 = vmatpush3.bf16.xpose.msra.mxu0 %v912_v22 }
  0x9c   :  { %3911 = vmatpush3.bf16.xpose.msra.mxu1 %v1019_v23  ;;  %3892 = vmatprep.subr.bf16.mxu0 %v4565_v1 }
  0x9d   :  { %3912 = vmatprep.subr.bf16.mxu1 %v4565_v1 }
  0xa3   :  { %3893 = vmatpush3.bf16.xpose.msra.mxu0 %v909_v24 }
  0xa4   :  { %3913 = vmatpush3.bf16.xpose.msra.mxu1 %v1016_v25  ;;  %3894 = vmatprep.subr.bf16.mxu0 %v4565_v1 }
  0xa5   :  { %12 = vsyncpa [#allocation3], 0  ;;  %3914 = vmatprep.subr.bf16.mxu1 %v4565_v1  ;;  %v4340_v27 = vld [vmem:[%s5809_s1 + $0x150] sm:$0xff]   ;;  %v906_v28 = vsel %vm467_vm0, %v4339_v26, 0  ;;  %v4341_v30 = vld [vmem:[%s5809_s1 + $0x108] sm:$0xff]   ;;  %v1297_v62 = vlaneseq  ;;  %v4568_v8 = vmov 0  }
  0xa6   :  { %v1013_v29 = vsel %vm467_vm0, %v4340_v27, 0  ;;  %v4342_v31 = vld [vmem:[%s5809_s1 + $0x148] sm:$0xff]   ;;  %v903_v32 = vsel %vm467_vm0, %v4341_v30, 0  ;;  %v4343_v34 = vld [vmem:[%s5809_s1 + $0x100] sm:$0xff]   ;;  %v4345_v38 = vld [vmem:[%s5809_s1 + $0x1b8] sm:$0xff]   ;;  %vm1406_vm6 = vcmask 1043456  }
  0xa7   :  { %v1010_v33 = vsel %vm467_vm0, %v4342_v31, 0  ;;  %v4344_v35 = vld [vmem:[%s5809_s1 + $0x140] sm:$0xff]   ;;  %v900_v36 = vsel %vm467_vm0, %v4343_v34, 0  ;;  %v4346_v39 = vld [vmem:[%s5809_s1 + $0x1f8] sm:$0xff]   ;;  %v32_v40 = vld [vmem:[%s5808_s0 + $0x8] sm:$0x3] }
  0xa8   :  { %v1007_v37 = vsel %vm467_vm0, %v4344_v35, 0  ;;  %v33_v41 = vld [vmem:[%s5808_s0 + $0xa] sm:$0x3]  ;;  %v1135_v42 = vsel %vm467_vm0, %v4345_v38, 0  ;;  %v1242_v43 = vsel %vm467_vm0, %v4346_v39, 0  ;;  %v4347_v44 = vld [vmem:[%s5809_s1 + $0x1b0] sm:$0xff]  }
  0xa9   :  { %v4348_v45 = vld [vmem:[%s5809_s1 + $0x1f0] sm:$0xff]   ;;  %v1132_v46 = vsel %vm467_vm0, %v4347_v44, 0  ;;  %v4349_v48 = vld [vmem:[%s5809_s1 + $0x1a8] sm:$0xff]   ;;  %v4351_v52 = vld [vmem:[%s5809_s1 + $0x1a0] sm:$0xff]   ;;  %v4567_v60 = vmov 1966171168  }
  0xaa   :  { %v1239_v47 = vsel %vm467_vm0, %v4348_v45, 0  ;;  %v4350_v49 = vld [vmem:[%s5809_s1 + $0x1e8] sm:$0xff]   ;;  %v1129_v50 = vsel %vm467_vm0, %v4349_v48, 0  ;;  %v4352_v53 = vld [vmem:[%s5809_s1 + $0x1e0] sm:$0xff]   ;;  %v1126_v54 = vsel %vm467_vm0, %v4351_v52, 0  ;;  %v4353_v56 = vld [vmem:[%s5809_s1 + $0x198] sm:$0xff]   ;;  %v1295_v61 = vunpack.c.l.s4 %v4567_v60 }
  0xab   :  { %3895 = vmatpush3.bf16.xpose.msra.mxu0 %v906_v28  ;;  %v1236_v51 = vsel %vm467_vm0, %v4350_v49, 0  ;;  %v1233_v55 = vsel %vm467_vm0, %v4352_v53, 0  ;;  %v4354_v57 = vld [vmem:[%s5809_s1 + $0x1d8] sm:$0xff]   ;;  %v1123_v58 = vsel %vm467_vm0, %v4353_v56, 0  ;;  %v4355_v63 = vld [vmem:[%s5809_s1 + $0x190] sm:$0xff]   ;;  %v4951_v2 = vld [vmem:[%s5812_s4] sm:$0xff] }
  0xac   :  { %3915 = vmatpush3.bf16.xpose.msra.mxu1 %v1013_v29  ;;  %3896 = vmatprep.subr.bf16.mxu0 %v4565_v1  ;;  %v1230_v59 = vsel %vm467_vm0, %v4354_v57, 0  ;;  %v4356_v0 = vld [vmem:[%s5809_s1 + $0x1d0] sm:$0xff]   ;;  %v1296_v3 = vunpack.c.0.s8 %v1295_v61  ;;  %v1298_v4 = vshrl.u32 %v1297_v62, 7  ;;  %v1120_v5 = vsel %vm467_vm0, %v4355_v63, 0  ;;  %v4357_v10 = vld [vmem:[%s5809_s1 + $0x188] sm:$0xff]   ;;  %v4359_v16 = vld [vmem:[%s5809_s1 + $0x180] sm:$0xff]  }
  0xad   :  { %3916 = vmatprep.subr.bf16.mxu1 %v4565_v1  ;;  %vm421_vm2 = vcmp.gt.f32.partialorder %v4951_v2, 0.5  ;;  %v1227_v6 = vsel %vm467_vm0, %v4356_v0, 0  ;;  %v4358_v11 = vld [vmem:[%s5809_s1 + $0x1c8] sm:$0xff]   ;;  %v1117_v13 = vsel %vm467_vm0, %v4357_v10, 0  ;;  %v4360_v18 = vld [vmem:[%s5809_s1 + $0x1c0] sm:$0xff]   ;;  %v1114_v20 = vsel %vm467_vm0, %v4359_v16, 0 }
  0xae   :  { %v4956_v7 = vsub.s32 %v1296_v3, %v1298_v4  ;;  %v4961_v9 = vsel %vm421_vm2, 1, %v4568_v8  ;;  %v1224_v14 = vsel %vm467_vm0, %v4358_v11, 0  ;;  %v1221_v21 = vsel %vm467_vm0, %v4360_v18, 0  ;;  %v34_v26 = vld [vmem:[%s5808_s0 + $0xc] sm:$0x3] }
  0xaf   :  { %v4987_v22 = vsub.s32 0, %v1298_v4  ;;  %v35_v27 = vld [vmem:[%s5808_s0 + $0xe] sm:$0x3]  ;;  %v1293_v63 = vcombine.high %v4961_v9, %v4961_v9 }
  0xb0   :  { %v1300_v12 = vrot.slane %v4961_v9, %v4956_v7 }
  0xb1   :  { %v1307_v0 = vrot.slane %v1293_v63, %v4956_v7 }
  0xb2   :  { %v1308_v15 = vcombine.high %v1300_v12, %v1300_v12  ;;  %v1316_v17 = vrot.slane %v1300_v12, %v4956_v7 }
  0xb3   :  { %3897 = vmatpush3.bf16.xpose.msra.mxu0 %v903_v32  ;;  %v1309_v3 = vcombine.high %v1307_v0, %v1307_v0  ;;  %v5031_v4 = vrot.slane %v1307_v0, %v4956_v7 }
  0xb4   :  { %3917 = vmatpush3.bf16.xpose.msra.mxu1 %v1010_v33  ;;  %3898 = vmatprep.subr.bf16.mxu0 %v4565_v1  ;;  %v1330_v19 = vrot.slane %v1308_v15, %v4956_v7  ;;  %vm1342_vm3 = vcmp.ne.s32.totalorder %v1316_v17, 0 }
  0xb5   :  { %3918 = vmatprep.subr.bf16.mxu1 %v4565_v1  ;;  %v1350_v23 = vsel %vm1342_vm3, 1, %v4568_v8  ;;  %vm1346_vm12 = vcmp.ne.s32.totalorder %v5031_v4, 0 }
  0xb6   :  { %vm1343_vm4 = vcmp.ne.s32.totalorder %v1330_v19, 0  ;;  %v1361_v25 = vrot.slane %v1350_v23, %v4987_v22  ;;  %v1340_v44 = vcombine.high %v1330_v19, %v1330_v19 }
  0xb7   :  { %v1351_v24 = vsel %vm1343_vm4, 1, %v4568_v8 }
  0xb8   :  { %v1365_v28 = vrot.slane %v1351_v24, %v4987_v22  ;;  %vm1390_vm5 = vcmp.eq.s32.totalorder %v1361_v25, 1  ;;  %vm1345_vm9 = vcmp.ne.s32.totalorder %v1340_v44, 0  ;;  %v4368_v44 = vld [vmem:[%s5810_s2 + $0x18] sm:$0xff]  }
  0xba   :  { %vm1391_vm7 = vcmp.eq.s32.totalorder %v1365_v28, 1 }
  0xbb   :  { %3899 = vmatpush3.bf16.xpose.msra.mxu0 %v900_v36 }
  0xbc   :  { %3919 = vmatpush3.bf16.xpose.msra.mxu1 %v1007_v37  ;;  %3924 = vmatprep.subr.bf16.mxu0 %v4565_v1 }
  0xbd   :  { %3944 = vmatprep.subr.bf16.mxu1 %v4565_v1 }
  0xc2   :  { %3901 = vmatmul.mubr.msk.bf16.vlgmr.msra.gmra.mxu0 %vm467_vm0, %v32_v40 }
  0xc3   :  { %3921 = vmatmul.mubr.msk.bf16.vlgmr.msra.gmra.mxu1 %vm467_vm0, %v33_v41  ;;  %3925 = vmatpush3.bf16.xpose.msra.mxu0 %v1135_v42 }
  0xc4   :  { %3945 = vmatpush3.bf16.xpose.msra.mxu1 %v1242_v43  ;;  %3926 = vmatprep.subr.bf16.mxu0 %v4565_v1  ;;  %v1338_v43 = vcombine.high %v1316_v17, %v1316_v17 }
  0xc5   :  { %3946 = vmatprep.subr.bf16.mxu1 %v4565_v1  ;;  %3940 = vmatprep.mubr.msk.bf16.mxu0 %vm4566_vm1, %v4565_v1 }
  0xc6   :  { %3960 = vmatprep.mubr.msk.bf16.mxu1 %vm4566_vm1, %v4565_v1  ;;  %vm1344_vm8 = vcmp.ne.s32.totalorder %v1338_v43, 0  ;;  %v4367_v43 = vld [vmem:[%s5810_s2 + $0x68] sm:$0xff]  }
  0xc7   :  { %v1352_v45 = vsel %vm1344_vm8, 1, %v4568_v8  ;;  %vm2296_vm8 = vcmask 1041409  }
  0xcb   :  { %3927 = vmatpush3.bf16.xpose.msra.mxu0 %v1132_v46  ;;  %v1353_v46 = vsel %vm1345_vm9, 1, %v4568_v8  ;;  %vm2298_vm9 = vcmask 1042434  }
  0xcc   :  { %3947 = vmatpush3.bf16.xpose.msra.mxu1 %v1239_v47  ;;  %3928 = vmatprep.subr.bf16.mxu0 %v4565_v1  ;;  %v1369_v47 = vrot.slane %v1352_v45, %v4987_v22  ;;  %v1373_v48 = vrot.slane %v1353_v46, %v4987_v22  ;;  %v4369_v45 = vld [vmem:[%s5810_s2 + $0x60] sm:$0xff]   ;;  %v4370_v46 = vld [vmem:[%s5810_s2 + $0x10] sm:$0xff]  }
  0xcd   :  { %3948 = vmatprep.subr.bf16.mxu1 %v4565_v1 }
  0xce   :  { %vm1392_vm10 = vcmp.eq.s32.totalorder %v1369_v47, 1  ;;  %vm1393_vm11 = vcmp.eq.s32.totalorder %v1373_v48, 1  ;;  %v4371_v47 = vld [vmem:[%s5810_s2 + $0x58] sm:$0xff]   ;;  %v1339_v48 = vcombine.high %v5031_v4, %v5031_v4 }
  0xd0   :  { %vm1348_vm3 = vcmp.ne.s32.totalorder %v1339_v48, 0  ;;  %v4384_v48 = vld [vmem:[%s5810_s2 + $0xe0] sm:$0xff]  }
  0xd3   :  { %3929 = vmatpush3.bf16.xpose.msra.mxu0 %v1129_v50 }
  0xd4   :  { %3949 = vmatpush3.bf16.xpose.msra.mxu1 %v1236_v51  ;;  %3930 = vmatprep.subr.bf16.mxu0 %v4565_v1 }
  0xd5   :  { %3950 = vmatprep.subr.bf16.mxu1 %v4565_v1 }
  0xdb   :  { %3931 = vmatpush3.bf16.xpose.msra.mxu0 %v1126_v54 }
  0xdc   :  { %3951 = vmatpush3.bf16.xpose.msra.mxu1 %v1233_v55  ;;  %3932 = vmatprep.subr.bf16.mxu0 %v4565_v1 }
  0xdd   :  { %3952 = vmatprep.subr.bf16.mxu1 %v4565_v1 }
  0xe3   :  { %3933 = vmatpush3.bf16.xpose.msra.mxu0 %v1123_v58 }
  0xe4   :  { %3953 = vmatpush3.bf16.xpose.msra.mxu1 %v1230_v59  ;;  %3934 = vmatprep.subr.bf16.mxu0 %v4565_v1 }
  0xe5   :  { %3954 = vmatprep.subr.bf16.mxu1 %v4565_v1 }
  0xeb   :  { %3935 = vmatpush3.bf16.xpose.msra.mxu0 %v1120_v5  ;;  %v5034_v5 = vrot.slane %v1309_v3, %v4956_v7 }
  0xec   :  { %3955 = vmatpush3.bf16.xpose.msra.mxu1 %v1227_v6  ;;  %3936 = vmatprep.subr.bf16.mxu0 %v4565_v1  ;;  %v1354_v6 = vsel %vm1346_vm12, 1, %v4568_v8  ;;  %vm2304_vm12 = vcmask 1045509  }
  0xed   :  { %3956 = vmatprep.subr.bf16.mxu1 %v4565_v1  ;;  %vm1347_vm13 = vcmp.ne.s32.totalorder %v5034_v5, 0  ;;  %v1377_v11 = vrot.slane %v1354_v6, %v4987_v22 }
  0xee   :  { %v1355_v10 = vsel %vm1347_vm13, 1, %v4568_v8  ;;  %vm2306_vm13 = vcmask 1046534  }
  0xef   :  { %v1381_v9 = vrot.slane %v1355_v10, %v4987_v22  ;;  %vm1394_vm14 = vcmp.eq.s32.totalorder %v1377_v11, 1 }
  0xf1   :  { %vm1395_vm15 = vcmp.eq.s32.totalorder %v1381_v9, 1 }
  0xf3   :  { %3937 = vmatpush3.bf16.xpose.msra.mxu0 %v1117_v13 }
  0xf4   :  { %3957 = vmatpush3.bf16.xpose.msra.mxu1 %v1224_v14  ;;  %3938 = vmatprep.subr.bf16.mxu0 %v4565_v1 }
  0xf5   :  { %3958 = vmatprep.subr.bf16.mxu1 %v4565_v1 }
  0xfb   :  { %3939 = vmatpush3.bf16.xpose.msra.mxu0 %v1114_v20 }
  0xfc   :  { %3959 = vmatpush3.bf16.xpose.msra.mxu1 %v1221_v21  ;;  %3964 = vmatprep.subr.bf16.mxu0 %v4565_v1 }
  0xfd   :  { %3984 = vmatprep.subr.bf16.mxu1 %v4565_v1 }
 0x102   :  { %v529_v29 = vpop.f32.mrf.mxu0  ;;  %3941 = vmatmul.mubr.msk.bf16.vlgmr.msra.gmra.mxu0 %vm467_vm0, %v34_v26 }
 0x103   :  { %v1284_v30 = vmul.f32 0.35355338, %v529_v29  ;;  %v636_v31 = vpop.f32.mrf.mxu1  ;;  %3961 = vmatmul.mubr.msk.bf16.vlgmr.msra.gmra.mxu1 %vm467_vm0, %v35_v27  ;;  %3980 = vmatprep.mubr.msk.bf16.mxu0 %vm4566_vm1, %v4565_v1 }
 0x104   :  { %v1285_v32 = vmul.f32 0.35355338, %v636_v31  ;;  %v3822_v33 = vpop.f32.mrf.mxu0  ;;  %4000 = vmatprep.mubr.msk.bf16.mxu1 %vm4566_vm1, %v4565_v1 }
 0x105   :  { %v3842_v34 = vpop.f32.mrf.mxu1  ;;  %v5007_v35 = vsel %vm1390_vm5, -inf, %v1284_v30 }
 0x106   :  { %v532_v36 = vpop.f32.mrf.mxu0  ;;  %v1407_v37 = vsel %vm1406_vm6, %v5007_v35, -inf  ;;  %v5011_v39 = vsel %vm1391_vm7, -inf, %v1285_v32  ;;  %v4361_v32 = vld [vmem:[%s5810_s2 + $0x38] sm:$0xff]  }
 0x107   :  { %v639_v38 = vpop.f32.mrf.mxu1  ;;  %1408 = vmax.xlane.f32.xlu0 %v1407_v37  ;;  %v1410_v42 = vsel %vm1406_vm6, %v5011_v39, -inf  ;;  %3965 = vmatpush3.bf16.msra.mxu0 %v4361_v32  ;;  %v4363_v37 = vld [vmem:[%s5810_s2 + $0x78] sm:$0xff]  }
 0x108   :  { %v3823_v40 = vpop.f32.mrf.mxu0  ;;  %3966 = vmatprep.subr.bf16.mxu0 %v4565_v1  ;;  %3985 = vmatpush3.bf16.msra.mxu1 %v4363_v37 }
 0x109   :  { %v3843_v41 = vpop.f32.mrf.mxu1  ;;  %v4365_v40 = vld [vmem:[%s5810_s2 + $0x70] sm:$0xff]   ;;  %3986 = vmatprep.subr.bf16.mxu1 %v4565_v1 }
 0x10b   :  { %1411 = vmax.xlane.f32.xlu0 %v1410_v42  ;;  %v4366_v42 = vld [vmem:[%s5810_s2 + $0x20] sm:$0xff]  }
 0x10c   :  { %3987 = vmatpush3.bf16.msra.mxu1 %v4365_v40 }
 0x10d   :  { %3988 = vmatprep.subr.bf16.mxu1 %v4565_v1 }
 0x110   :  { %3989 = vmatpush3.bf16.msra.mxu1 %v4367_v43  ;;  %v4378_v43 = vld [vmem:[%s5810_s2 + $0xb0] sm:$0xff]  }
 0x111   :  { %3990 = vmatprep.subr.bf16.mxu1 %v4565_v1 }
 0x114   :  { %3991 = vmatpush3.bf16.msra.mxu1 %v4369_v45  ;;  %v4381_v45 = vld [vmem:[%s5810_s2 + $0xf0] sm:$0xff]  }
 0x115   :  { %3992 = vmatprep.subr.bf16.mxu1 %v4565_v1 }
 0x118   :  { %3993 = vmatpush3.bf16.msra.mxu1 %v4371_v47  ;;  %v4383_v47 = vld [vmem:[%s5810_s2 + $0xe8] sm:$0xff]  }
 0x119   :  { %3994 = vmatprep.subr.bf16.mxu1 %v4565_v1 }
 0x142   :  { %v743_v49 = vpop.f32.mrf.mxu0 }
 0x143   :  { %v1286_v50 = vmul.f32 0.35355338, %v743_v49  ;;  %v850_v51 = vpop.f32.mrf.mxu1  ;;  %v1341_v49 = vcombine.high %v5034_v5, %v5034_v5 }
 0x144   :  { %v1287_v52 = vmul.f32 0.35355338, %v850_v51  ;;  %v3862_v53 = vpop.f32.mrf.mxu0  ;;  %v4373_v51 = vld [vmem:[%s5810_s2 + $0x50] sm:$0xff]  }
 0x145   :  { %v3882_v54 = vpop.f32.mrf.mxu1  ;;  %v5019_v55 = vsel %vm1392_vm10, -inf, %v1286_v50  ;;  %v4372_v50 = vld [vmem:[%s5810_s2 + $0x8] sm:$0xff]   ;;  %vm1349_vm4 = vcmp.ne.s32.totalorder %v1341_v49, 0  ;;  %3995 = vmatpush3.bf16.msra.mxu1 %v4373_v51  ;;  %v4385_v49 = vld [vmem:[%s5810_s2 + $0x98] sm:$0xff]   ;;  %vm2300_vm10 = vcmask 1043459  }
 0x146   :  { %v746_v56 = vpop.f32.mrf.mxu0  ;;  %v1413_v57 = vsel %vm1406_vm6, %v5019_v55, -inf  ;;  %v5023_v59 = vsel %vm1393_vm11, -inf, %v1287_v52  ;;  %v4374_v52 = vld [vmem:[%s5810_s2] sm:$0xff]   ;;  %v4375_v53 = vld [vmem:[%s5810_s2 + $0x48] sm:$0xff]   ;;  %v1356_v54 = vsel %vm1348_vm3, 1, %v4568_v8  ;;  %3996 = vmatprep.subr.bf16.mxu1 %v4565_v1  ;;  %vm2302_vm11 = vcmask 1044484  }
 0x147   :  { %v853_v58 = vpop.f32.mrf.mxu1  ;;  %1414 = vmax.xlane.f32.xlu1 %v1413_v57  ;;  %v1416_v62 = vsel %vm1406_vm6, %v5023_v59, -inf  ;;  %v1357_v56 = vsel %vm1349_vm4, 1, %v4568_v8  ;;  %v1385_v57 = vrot.slane %v1356_v54, %v4987_v22  ;;  %v4387_v54 = vld [vmem:[%s5810_s2 + $0xd8] sm:$0xff]  }
 0x148   :  { %v3863_v60 = vpop.f32.mrf.mxu0  ;;  %v1389_v58 = vrot.slane %v1357_v56, %v4987_v22 }
 0x149   :  { %v3883_v61 = vpop.f32.mrf.mxu1  ;;  %3997 = vmatpush3.bf16.msra.mxu1 %v4375_v53  ;;  %v4376_v60 = vld [vmem:[%s5810_s2 + $0x40] sm:$0xff]   ;;  %vm1396_vm5 = vcmp.eq.s32.totalorder %v1385_v57, 1  ;;  %v4386_v53 = vld [vmem:[%s5810_s2 + $0x90] sm:$0xff]  }
 0x14a   :  { %3998 = vmatprep.subr.bf16.mxu1 %v4565_v1  ;;  %vm1397_vm7 = vcmp.eq.s32.totalorder %v1389_v58, 1 }
 0x14b   :  { %1417 = vmax.xlane.f32.xlu1 %v1416_v62 }
 0x14d   :  { %3999 = vmatpush3.bf16.msra.mxu1 %v4376_v60  ;;  %v4388_v60 = vld [vmem:[%s5810_s2 + $0x88] sm:$0xff]  }
 0x14e   :  { %4024 = vmatprep.subr.bf16.mxu1 %v4565_v1 }
 0x182   :  { %v957_v12 = vpop.f32.mrf.mxu0 }
 0x183   :  { %v1288_v13 = vmul.f32 0.35355338, %v957_v12  ;;  %v1064_v14 = vpop.f32.mrf.mxu1 }
 0x184   :  { %v1289_v15 = vmul.f32 0.35355338, %v1064_v14  ;;  %v3902_v16 = vpop.f32.mrf.mxu0 }
 0x185   :  { %v3922_v17 = vpop.f32.mrf.mxu1  ;;  %v5042_v18 = vsel %vm1394_vm14, -inf, %v1288_v13  ;;  %vm2308_vm14 = vcmask 1047559  }
 0x186   :  { %v960_v19 = vpop.f32.mrf.mxu0  ;;  %v5044_v20 = vsel %vm1395_vm15, -inf, %v1289_v15  ;;  %v1419_v21 = vsel %vm1406_vm6, %v5042_v18, -inf }
 0x187   :  { %v1067_v23 = vpop.f32.mrf.mxu1  ;;  %v1422_v24 = vsel %vm1406_vm6, %v5044_v20, -inf  ;;  %1420 = vmax.xlane.f32.xlu0 %v1419_v21 }
 0x188   :  { %1423 = vmax.xlane.f32.xlu1 %v1422_v24  ;;  %v3903_v25 = vpop.f32.mrf.mxu0 }
 0x189   :  { %v3923_v26 = vpop.f32.mrf.mxu1 }
 0x190   :  { %v1409_v27 = vpop.xlane.xlu0 %1408 }
 0x191   :  { %v1431_v28 = vsub.f32 %v5007_v35, %v1409_v27  ;;  %v4362_v35 = vld [vmem:[%s5810_s2 + $0x30] sm:$0xff]  }
 0x192   :  { %3967 = vmatpush3.bf16.msra.mxu0 %v4362_v35 }
 0x193   :  { %v1439_v29 = vmul.f32 1.442695, %v1431_v28  ;;  %3968 = vmatprep.subr.bf16.mxu0 %v4565_v1 }
 0x194   :  { %v1412_v30 = vpop.xlane.xlu0 %1411 }
 0x195   :  { %4491 = vpow2.f32 %v1439_v29  ;;  %v1432_v31 = vsub.f32 %v5011_v39, %v1412_v30  ;;  %v4364_v39 = vld [vmem:[%s5810_s2 + $0x28] sm:$0xff]  }
 0x196   :  { %3969 = vmatpush3.bf16.msra.mxu0 %v4364_v39  ;;  %v4377_v39 = vld [vmem:[%s5810_s2 + $0xb8] sm:$0xff]  }
 0x197   :  { %v1441_v33 = vmul.f32 1.442695, %v1432_v31  ;;  %3970 = vmatprep.subr.bf16.mxu0 %v4565_v1 }
 0x199   :  { %4493 = vpow2.f32 %v1441_v33 }
 0x19a   :  { %3971 = vmatpush3.bf16.msra.mxu0 %v4366_v42 }
 0x19b   :  { %3972 = vmatprep.subr.bf16.mxu0 %v4565_v1 }
 0x19e   :  { %3973 = vmatpush3.bf16.msra.mxu0 %v4368_v44  ;;  %v4379_v44 = vld [vmem:[%s5810_s2 + $0xf8] sm:$0xff]  }
 0x19f   :  { %3974 = vmatprep.subr.bf16.mxu0 %v4565_v1 }
 0x1a2   :  { %v5056_v34 = vpop.eup %4491  ;;  %3975 = vmatpush3.bf16.msra.mxu0 %v4370_v46  ;;  %v4382_v46 = vld [vmem:[%s5810_s2 + $0xa0] sm:$0xff]  }
 0x1a3   :  { %v1455_v36 = vsel %vm1406_vm6, %v5056_v34, 0.0  ;;  %3976 = vmatprep.subr.bf16.mxu0 %v4565_v1 }
 0x1a4   :  { %1456 = vadd.xlane.f32.xlu0 %v1455_v36 }
 0x1a6   :  { %v5066_v38 = vpop.eup %4493  ;;  %3977 = vmatpush3.bf16.msra.mxu0 %v4372_v50 }
 0x1a7   :  { %v1458_v41 = vsel %vm1406_vm6, %v5066_v38, 0.0  ;;  %3978 = vmatprep.subr.bf16.mxu0 %v4565_v1 }
 0x1a8   :  { %1459 = vadd.xlane.f32.xlu1 %v1458_v41 }
 0x1aa   :  { %3979 = vmatpush3.bf16.msra.mxu0 %v4374_v52 }
 0x1ab   :  { %4004 = vmatprep.subr.bf16.mxu0 %v4565_v1 }
 0x1c2   :  { %v1171_v61 = vpop.f32.mrf.mxu0 }
 0x1c3   :  { %v1290_v62 = vmul.f32 0.35355338, %v1171_v61  ;;  %v1278_v63 = vpop.f32.mrf.mxu1  ;;  %v4389_v61 = vld [vmem:[%s5810_s2 + $0xd0] sm:$0xff]  }
 0x1c4   :  { %v1291_v8 = vmul.f32 0.35355338, %v1278_v63  ;;  %v3942_v0 = vpop.f32.mrf.mxu0  ;;  %v4391_v63 = vld [vmem:[%s5810_s2 + $0xc8] sm:$0xff]  }
 0x1c5   :  { %v3962_v3 = vpop.f32.mrf.mxu1  ;;  %v5132_v4 = vsel %vm1396_vm5, -inf, %v1290_v62  ;;  %v4390_v62 = vld [vmem:[%s5810_s2 + $0x80] sm:$0xff]  }
 0x1c6   :  { %v1174_v5 = vpop.f32.mrf.mxu0  ;;  %v5134_v6 = vsel %vm1397_vm7, -inf, %v1291_v8  ;;  %v1425_v10 = vsel %vm1406_vm6, %v5132_v4, -inf  ;;  %v4392_v8 = vld [vmem:[%s5810_s2 + $0xc0] sm:$0xff]  }
 0x1c7   :  { %v1281_v11 = vpop.f32.mrf.mxu1  ;;  %v1428_v9 = vsel %vm1406_vm6, %v5134_v6, -inf  ;;  %1426 = vmax.xlane.f32.xlu0 %v1425_v10 }
 0x1c8   :  { %1429 = vmax.xlane.f32.xlu1 %v1428_v9  ;;  %v3943_v12 = vpop.f32.mrf.mxu0 }
 0x1c9   :  { %v3963_v13 = vpop.f32.mrf.mxu1  ;;  %v4393_v12 = vld [vmem:[%s5810_s2 + $0x138] sm:$0xff]  }
 0x1d0   :  { %v1415_v14 = vpop.xlane.xlu1 %1414 }
 0x1d1   :  { %v1433_v15 = vsub.f32 %v5019_v55, %v1415_v14 }
 0x1d3   :  { %v1443_v16 = vmul.f32 1.442695, %v1433_v15 }
 0x1d4   :  { %v1418_v17 = vpop.xlane.xlu1 %1417 }
 0x1d5   :  { %4495 = vpow2.f32 %v1443_v16  ;;  %v1434_v19 = vsub.f32 %v5023_v59, %v1418_v17  ;;  %v4394_v16 = vld [vmem:[%s5810_s2 + $0x178] sm:$0xff]   ;;  %v4395_v17 = vld [vmem:[%s5810_s2 + $0x130] sm:$0xff]  }
 0x1d7   :  { %v1445_v21 = vmul.f32 1.442695, %v1434_v19 }
 0x1d9   :  { %4497 = vpow2.f32 %v1445_v21  ;;  %v4396_v21 = vld [vmem:[%s5810_s2 + $0x170] sm:$0xff]  }
 0x1e2   :  { %v5142_v23 = vpop.eup %4495 }
 0x1e3   :  { %v1461_v24 = vsel %vm1406_vm6, %v5142_v23, 0.0 }
 0x1e4   :  { %1462 = vadd.xlane.f32.xlu0 %v1461_v24  ;;  %v4398_v24 = vld [vmem:[%s5810_s2 + $0x168] sm:$0xff]  }
 0x1e6   :  { %v5146_v25 = vpop.eup %4497 }
 0x1e7   :  { %v1464_v26 = vsel %vm1406_vm6, %v5146_v25, 0.0 }
 0x1e8   :  { %1465 = vadd.xlane.f32.xlu1 %v1464_v26  ;;  %v4399_v26 = vld [vmem:[%s5810_s2 + $0x160] sm:$0xff]  }
 0x210   :  { %v1421_v55 = vpop.xlane.xlu0 %1420 }
 0x211   :  { %v1424_v27 = vpop.xlane.xlu1 %1423  ;;  %v1435_v28 = vsub.f32 %v5042_v18, %v1421_v55  ;;  %v4401_v55 = vld [vmem:[%s5810_s2 + $0x118] sm:$0xff]  }
 0x212   :  { %v1436_v59 = vsub.f32 %v5044_v20, %v1424_v27  ;;  %v4402_v27 = vld [vmem:[%s5810_s2 + $0x158] sm:$0xff]  }
 0x213   :  { %v1447_v29 = vmul.f32 1.442695, %v1435_v28  ;;  %v4403_v28 = vld [vmem:[%s5810_s2 + $0x110] sm:$0xff]  }
 0x214   :  { %v1449_v30 = vmul.f32 1.442695, %v1436_v59  ;;  %v4404_v59 = vld [vmem:[%s5810_s2 + $0x150] sm:$0xff]  }
 0x215   :  { %4499 = vpow2.f32 %v1447_v29  ;;  %v4405_v29 = vld [vmem:[%s5810_s2 + $0x108] sm:$0xff]  }
 0x216   :  { %4501 = vpow2.f32 %v1449_v30  ;;  %v4406_v30 = vld [vmem:[%s5810_s2 + $0x148] sm:$0xff]  }
 0x222   :  { %v5152_v31 = vpop.eup %4499 }
 0x223   :  { %v5154_v32 = vpop.eup %4501  ;;  %v1467_v33 = vsel %vm1406_vm6, %v5152_v31, 0.0 }
 0x224   :  { %v1470_v36 = vsel %vm1406_vm6, %v5154_v32, 0.0  ;;  %1468 = vadd.xlane.f32.xlu0 %v1467_v33  ;;  %v4407_v33 = vld [vmem:[%s5810_s2 + $0x100] sm:$0xff]  }
 0x225   :  { %1471 = vadd.xlane.f32.xlu1 %v1470_v36  ;;  %v4408_v36 = vld [vmem:[%s5810_s2 + $0x140] sm:$0xff]  }
 0x22d   :  { %v1457_v35 = vpop.xlane.xlu0 %1456 }
 0x22e   :  { %4503 = vrcp.f32 %v1457_v35 }
 0x231   :  { %v1460_v18 = vpop.xlane.xlu1 %1459 }
 0x232   :  { %4505 = vrcp.f32 %v1460_v18 }
 0x23b   :  { %v4504_v20 = vpop.eup %4503 }
 0x23c   :  { %v1487_v37 = vmul.f32 %v4504_v20, %v5056_v34 }
 0x23e   :  { %v1495_v40 = vpack.c.bf16 %v1487_v37, %v1487_v37 }
 0x23f   :  { %v4506_v41 = vpop.eup %4505 }
 0x240   :  { %3981 = vmatmul.mubr.bf16.vlgmr.msra.gmra.mxu0 %v1495_v40  ;;  %v1488_v42 = vmul.f32 %v4506_v41, %v5066_v38  ;;  %v4380_v38 = vld [vmem:[%s5810_s2 + $0xa8] sm:$0xff]   ;;  %v4409_v41 = vld [vmem:[%s5810_s2 + $0x1b8] sm:$0xff]  }
 0x241   :  { %4005 = vmatpush3.bf16.msra.mxu0 %v4377_v39  ;;  %4020 = vmatprep.mubr.msk.bf16.mxu0 %vm4566_vm1, %v4565_v1 }
 0x242   :  { %v1496_v34 = vpack.c.bf16 %v1488_v42, %v1488_v42  ;;  %4006 = vmatprep.subr.bf16.mxu0 %v4565_v1 }
 0x244   :  { %4001 = vmatmul.mubr.bf16.vlgmr.msra.gmra.mxu1 %v1496_v34  ;;  %v4411_v34 = vld [vmem:[%s5810_s2 + $0x1b0] sm:$0xff]  }
 0x245   :  { %4007 = vmatpush3.bf16.msra.mxu0 %v4378_v43  ;;  %4025 = vmatpush3.bf16.msra.mxu1 %v4379_v44  ;;  %v4410_v43 = vld [vmem:[%s5810_s2 + $0x1f8] sm:$0xff]  }
 0x246   :  { %4008 = vmatprep.subr.bf16.mxu0 %v4565_v1  ;;  %4026 = vmatprep.subr.bf16.mxu1 %v4565_v1 }
 0x247   :  { %4040 = vmatprep.mubr.msk.bf16.mxu1 %vm4566_vm1, %v4565_v1 }
 0x249   :  { %4009 = vmatpush3.bf16.msra.mxu0 %v4380_v38  ;;  %4027 = vmatpush3.bf16.msra.mxu1 %v4381_v45  ;;  %v4414_v38 = vld [vmem:[%s5810_s2 + $0x1e8] sm:$0xff]   ;;  %v4416_v45 = vld [vmem:[%s5810_s2 + $0x1a0] sm:$0xff]  }
 0x24a   :  { %4010 = vmatprep.subr.bf16.mxu0 %v4565_v1  ;;  %4028 = vmatprep.subr.bf16.mxu1 %v4565_v1 }
 0x24d   :  { %4011 = vmatpush3.bf16.msra.mxu0 %v4382_v46  ;;  %4029 = vmatpush3.bf16.msra.mxu1 %v4383_v47  ;;  %v4415_v46 = vld [vmem:[%s5810_s2 + $0x1e0] sm:$0xff]   ;;  %v4417_v47 = vld [vmem:[%s5810_s2 + $0x198] sm:$0xff]  }
 0x24e   :  { %4012 = vmatprep.subr.bf16.mxu0 %v4565_v1  ;;  %4030 = vmatprep.subr.bf16.mxu1 %v4565_v1 }
 0x250   :  { %v1427_v50 = vpop.xlane.xlu0 %1426 }
 0x251   :  { %v1430_v51 = vpop.xlane.xlu1 %1429  ;;  %v1437_v52 = vsub.f32 %v5132_v4, %v1427_v50  ;;  %4031 = vmatpush3.bf16.msra.mxu1 %v4384_v48  ;;  %4013 = vmatpush3.bf16.msra.mxu0 %v4385_v49  ;;  %v4418_v48 = vld [vmem:[%s5810_s2 + $0x1d8] sm:$0xff]   ;;  %v4419_v49 = vld [vmem:[%s5810_s2 + $0x190] sm:$0xff]  }
 0x252   :  { %v1438_v56 = vsub.f32 %v5134_v6, %v1430_v51  ;;  %4014 = vmatprep.subr.bf16.mxu0 %v4565_v1  ;;  %4032 = vmatprep.subr.bf16.mxu1 %v4565_v1  ;;  %v4420_v50 = vld [vmem:[%s5810_s2 + $0x1d0] sm:$0xff]   ;;  %v4421_v51 = vld [vmem:[%s5810_s2 + $0x188] sm:$0xff]  }
 0x253   :  { %v1451_v57 = vmul.f32 1.442695, %v1437_v52  ;;  %v4422_v52 = vld [vmem:[%s5810_s2 + $0x1c8] sm:$0xff]  }
 0x254   :  { %v1453_v58 = vmul.f32 1.442695, %v1438_v56 }
 0x255   :  { %4507 = vpow2.f32 %v1451_v57  ;;  %4015 = vmatpush3.bf16.msra.mxu0 %v4386_v53  ;;  %4033 = vmatpush3.bf16.msra.mxu1 %v4387_v54  ;;  %v4423_v53 = vld [vmem:[%s5810_s2 + $0x180] sm:$0xff]  }
 0x256   :  { %4509 = vpow2.f32 %v1453_v58  ;;  %4016 = vmatprep.subr.bf16.mxu0 %v4565_v1  ;;  %4034 = vmatprep.subr.bf16.mxu1 %v4565_v1  ;;  %v4424_v54 = vld [vmem:[%s5810_s2 + $0x1c0] sm:$0xff]  }
 0x259   :  { %4017 = vmatpush3.bf16.msra.mxu0 %v4388_v60  ;;  %4035 = vmatpush3.bf16.msra.mxu1 %v4389_v61 }
 0x25a   :  { %4018 = vmatprep.subr.bf16.mxu0 %v4565_v1  ;;  %4036 = vmatprep.subr.bf16.mxu1 %v4565_v1 }
 0x25d   :  { %4019 = vmatpush3.bf16.msra.mxu0 %v4390_v62  ;;  %4037 = vmatpush3.bf16.msra.mxu1 %v4391_v63  ;;  %v5385_v63 = vld [vmem:[%s5814_s6] sm:$0xf] }
 0x25e   :  { %4038 = vmatprep.subr.bf16.mxu1 %v4565_v1  ;;  %4044 = vmatprep.subr.bf16.mxu0 %v4565_v1 }
 0x261   :  { %4039 = vmatpush3.bf16.msra.mxu1 %v4392_v8 }
 0x262   :  { %v5231_v0 = vpop.eup %4507  ;;  %4064 = vmatprep.subr.bf16.mxu1 %v4565_v1 }
 0x263   :  { %v5234_v3 = vpop.eup %4509  ;;  %v1473_v4 = vsel %vm1406_vm6, %v5231_v0, 0.0 }
 0x264   :  { %v1476_v5 = vsel %vm1406_vm6, %v5234_v3, 0.0  ;;  %1474 = vadd.xlane.f32.xlu0 %v1473_v4  ;;  %vm2215_vm6 = vcmask 257024  }
 0x265   :  { %1477 = vadd.xlane.f32.xlu1 %v1476_v5 }
 0x26d   :  { %v1463_v6 = vpop.xlane.xlu0 %1462 }
 0x26e   :  { %4511 = vrcp.f32 %v1463_v6 }
 0x271   :  { %v1466_v10 = vpop.xlane.xlu1 %1465 }
 0x272   :  { %4513 = vrcp.f32 %v1466_v10 }
 0x27b   :  { %v4512_v11 = vpop.eup %4511 }
 0x27c   :  { %v1489_v9 = vmul.f32 %v4512_v11, %v5142_v23  ;;  %v4397_v23 = vld [vmem:[%s5810_s2 + $0x128] sm:$0xff]  }
 0x27e   :  { %v1497_v13 = vpack.c.bf16 %v1489_v9, %v1489_v9 }
 0x27f   :  { %v4514_v14 = vpop.eup %4513 }
 0x280   :  { %4021 = vmatmul.mubr.bf16.vlgmr.msra.gmra.mxu0 %v1497_v13  ;;  %v1490_v15 = vmul.f32 %v4514_v14, %v5146_v25  ;;  %v4400_v25 = vld [vmem:[%s5810_s2 + $0x120] sm:$0xff]  }
 0x281   :  { %4045 = vmatpush3.bf16.msra.mxu0 %v4393_v12  ;;  %4060 = vmatprep.mubr.msk.bf16.mxu0 %vm4566_vm1, %v4565_v1 }
 0x282   :  { %v1498_v19 = vpack.c.bf16 %v1490_v15, %v1490_v15  ;;  %4046 = vmatprep.subr.bf16.mxu0 %v4565_v1 }
 0x284   :  { %4041 = vmatmul.mubr.bf16.vlgmr.msra.gmra.mxu1 %v1498_v19 }
 0x285   :  { %4065 = vmatpush3.bf16.msra.mxu1 %v4394_v16  ;;  %4047 = vmatpush3.bf16.msra.mxu0 %v4395_v17 }
 0x286   :  { %4066 = vmatprep.subr.bf16.mxu1 %v4565_v1  ;;  %4048 = vmatprep.subr.bf16.mxu0 %v4565_v1 }
 0x287   :  { %4080 = vmatprep.mubr.msk.bf16.mxu1 %vm4566_vm1, %v4565_v1 }
 0x289   :  { %4067 = vmatpush3.bf16.msra.mxu1 %v4396_v21  ;;  %4049 = vmatpush3.bf16.msra.mxu0 %v4397_v23 }
 0x28a   :  { %4068 = vmatprep.subr.bf16.mxu1 %v4565_v1  ;;  %4050 = vmatprep.subr.bf16.mxu0 %v4565_v1 }
 0x28d   :  { %4069 = vmatpush3.bf16.msra.mxu1 %v4398_v24  ;;  %4051 = vmatpush3.bf16.msra.mxu0 %v4400_v25 }
 0x28e   :  { %4070 = vmatprep.subr.bf16.mxu1 %v4565_v1  ;;  %4052 = vmatprep.subr.bf16.mxu0 %v4565_v1 }
 0x291   :  { %4071 = vmatpush3.bf16.msra.mxu1 %v4399_v26  ;;  %4053 = vmatpush3.bf16.msra.mxu0 %v4401_v55 }
 0x292   :  { %4072 = vmatprep.subr.bf16.mxu1 %v4565_v1  ;;  %4054 = vmatprep.subr.bf16.mxu0 %v4565_v1 }
 0x295   :  { %4073 = vmatpush3.bf16.msra.mxu1 %v4402_v27  ;;  %4055 = vmatpush3.bf16.msra.mxu0 %v4403_v28 }
 0x296   :  { %4074 = vmatprep.subr.bf16.mxu1 %v4565_v1  ;;  %4056 = vmatprep.subr.bf16.mxu0 %v4565_v1 }
 0x299   :  { %4075 = vmatpush3.bf16.msra.mxu1 %v4404_v59  ;;  %4057 = vmatpush3.bf16.msra.mxu0 %v4405_v29 }
 0x29a   :  { %4076 = vmatprep.subr.bf16.mxu1 %v4565_v1  ;;  %4058 = vmatprep.subr.bf16.mxu0 %v4565_v1 }
 0x29d   :  { %4077 = vmatpush3.bf16.msra.mxu1 %v4406_v30  ;;  %4059 = vmatpush3.bf16.msra.mxu0 %v4407_v33 }
 0x29e   :  { %4078 = vmatprep.subr.bf16.mxu1 %v4565_v1  ;;  %4084 = vmatprep.subr.bf16.mxu0 %v4565_v1 }
 0x2a1   :  { %4079 = vmatpush3.bf16.msra.mxu1 %v4408_v36 }
 0x2a2   :  { %4104 = vmatprep.subr.bf16.mxu1 %v4565_v1 }
 0x2ad   :  { %v1469_v35 = vpop.xlane.xlu0 %1468 }
 0x2ae   :  { %v1472_v18 = vpop.xlane.xlu1 %1471  ;;  %4515 = vrcp.f32 %v1469_v35 }
 0x2af   :  { %4517 = vrcp.f32 %v1472_v18 }
 0x2bb   :  { %v4516_v20 = vpop.eup %4515 }
 0x2bc   :  { %v4518_v37 = vpop.eup %4517  ;;  %v1491_v39 = vmul.f32 %v4516_v20, %v5152_v31  ;;  %v4412_v31 = vld [vmem:[%s5810_s2 + $0x1f0] sm:$0xff]  }
 0x2bd   :  { %v1492_v40 = vmul.f32 %v4518_v37, %v5154_v32  ;;  %v4413_v32 = vld [vmem:[%s5810_s2 + $0x1a8] sm:$0xff]  }
 0x2be   :  { %v1499_v42 = vpack.c.bf16 %v1491_v39, %v1491_v39 }
 0x2bf   :  { %v1500_v44 = vpack.c.bf16 %v1492_v40, %v1492_v40 }
 0x2c0   :  { %4061 = vmatmul.mubr.bf16.vlgmr.msra.gmra.mxu0 %v1499_v42 }
 0x2c1   :  { %4081 = vmatmul.mubr.bf16.vlgmr.msra.gmra.mxu1 %v1500_v44  ;;  %4085 = vmatpush3.bf16.msra.mxu0 %v4409_v41 }
 0x2c2   :  { %4105 = vmatpush3.bf16.msra.mxu1 %v4410_v43  ;;  %4086 = vmatprep.subr.bf16.mxu0 %v4565_v1 }
 0x2c3   :  { %4106 = vmatprep.subr.bf16.mxu1 %v4565_v1  ;;  %4100 = vmatprep.mubr.msk.bf16.mxu0 %vm4566_vm1, %v4565_v1 }
 0x2c4   :  { %4120 = vmatprep.mubr.msk.bf16.mxu1 %vm4566_vm1, %v4565_v1 }
 0x2c5   :  { %4087 = vmatpush3.bf16.msra.mxu0 %v4411_v34 }
 0x2c6   :  { %4107 = vmatpush3.bf16.msra.mxu1 %v4412_v31  ;;  %4088 = vmatprep.subr.bf16.mxu0 %v4565_v1 }
 0x2c7   :  { %4108 = vmatprep.subr.bf16.mxu1 %v4565_v1 }
 0x2c9   :  { %4089 = vmatpush3.bf16.msra.mxu0 %v4413_v32 }
 0x2ca   :  { %4109 = vmatpush3.bf16.msra.mxu1 %v4414_v38  ;;  %4090 = vmatprep.subr.bf16.mxu0 %v4565_v1 }
 0x2cb   :  { %4110 = vmatprep.subr.bf16.mxu1 %v4565_v1 }
 0x2cd   :  { %4091 = vmatpush3.bf16.msra.mxu0 %v4416_v45 }
 0x2ce   :  { %4111 = vmatpush3.bf16.msra.mxu1 %v4415_v46  ;;  %4092 = vmatprep.subr.bf16.mxu0 %v4565_v1 }
 0x2cf   :  { %4112 = vmatprep.subr.bf16.mxu1 %v4565_v1 }
 0x2d1   :  { %4093 = vmatpush3.bf16.msra.mxu0 %v4417_v47 }
 0x2d2   :  { %4113 = vmatpush3.bf16.msra.mxu1 %v4418_v48  ;;  %4094 = vmatprep.subr.bf16.mxu0 %v4565_v1 }
 0x2d3   :  { %4114 = vmatprep.subr.bf16.mxu1 %v4565_v1 }
 0x2d5   :  { %4095 = vmatpush3.bf16.msra.mxu0 %v4419_v49 }
 0x2d6   :  { %4115 = vmatpush3.bf16.msra.mxu1 %v4420_v50  ;;  %4096 = vmatprep.subr.bf16.mxu0 %v4565_v1 }
 0x2d7   :  { %4116 = vmatprep.subr.bf16.mxu1 %v4565_v1 }
 0x2d9   :  { %4097 = vmatpush3.bf16.msra.mxu0 %v4421_v51 }
 0x2da   :  { %4117 = vmatpush3.bf16.msra.mxu1 %v4422_v52  ;;  %4098 = vmatprep.subr.bf16.mxu0 %v4565_v1 }
 0x2db   :  { %4118 = vmatprep.subr.bf16.mxu1 %v4565_v1 }
 0x2dd   :  { %4099 = vmatpush3.bf16.msra.mxu0 %v4423_v53 }
 0x2de   :  { %4119 = vmatpush3.bf16.msra.mxu1 %v4424_v54  ;;  %4124 = vmatprep.subr.bf16.mxu0 %v4565_v1 }
 0x2df   :  { %4132 = vmatprep.subr.bf16.mxu1 %v4565_v1 }
 0x2ed   :  { %v1475_v56 = vpop.xlane.xlu0 %1474 }
 0x2ee   :  { %v1478_v57 = vpop.xlane.xlu1 %1477  ;;  %4519 = vrcp.f32 %v1475_v56 }
 0x2ef   :  { %4521 = vrcp.f32 %v1478_v57 }
 0x2fb   :  { %v4520_v58 = vpop.eup %4519 }
 0x2fc   :  { %v4522_v60 = vpop.eup %4521  ;;  %v1493_v61 = vmul.f32 %v4520_v58, %v5231_v0  ;;  %v4425_v58 = vld [vmem:[%s5813_s5 + $0x8] sm:$0xff]  }
 0x2fd   :  { %v1494_v62 = vmul.f32 %v4522_v60, %v5234_v3 }
 0x2fe   :  { %v1501_v8 = vpack.c.bf16 %v1493_v61, %v1493_v61 }
 0x2ff   :  { %v1502_v4 = vpack.c.bf16 %v1494_v62, %v1494_v62 }
 0x300   :  { %v1585_v5 = vpop.f32.mrf.mxu0  ;;  %4101 = vmatmul.mubr.bf16.vlgmr.msra.gmra.mxu0 %v1501_v8 }
 0x301   :  { %v2207_v6 = vmul.f32 %v1585_v5, %v5385_v63  ;;  %4121 = vmatmul.mubr.bf16.vlgmr.msra.gmra.mxu1 %v1502_v4  ;;  %4128 = vmatprep.mubr.msk.bf16.mxu0 %vm4566_vm1, %v4565_v1  ;;  %v4426_v4 = vld [vmem:[%s5813_s5] sm:$0xff]  }
 0x302   :  { %v3982_v10 = vpop.f32.mrf.mxu0  ;;  %4148 = vmatprep.mubr.msk.bf16.mxu1 %vm4566_vm1, %v4565_v1  ;;  %4125 = vmatpush3.bf16.msra.mxu0 %v4425_v58 }
 0x303   :  { %v2216_v0 = vsel %vm2215_vm6, %v2207_v6, 0.0  ;;  %4126 = vmatprep.subr.bf16.mxu0 %v4565_v1  ;;  %v4427_v10 = vld [vmem:[%s5811_s3 + $0x38] sm:$0xff]  }
 0x304   :  { %v2217_v3 = vrot.slane %v2216_v0, 4  ;;  %v1588_v11 = vpop.f32.mrf.mxu0  ;;  %v1673_v9 = vpop.f32.mrf.mxu1 }
 0x305   :  { %v2208_v12 = vmul.f32 %v1673_v9, %v5385_v63  ;;  %v4431_v9 = vld [vmem:[%s5811_s3 + $0x28] sm:$0xff]  }
 0x306   :  { %v2218_v13 = vadd.f32 %v2217_v3, %v2216_v0  ;;  %v3983_v14 = vpop.f32.mrf.mxu0  ;;  %v4002_v15 = vpop.f32.mrf.mxu1  ;;  %4127 = vmatpush3.bf16.msra.mxu0 %v4426_v4  ;;  %v2470_v0 = vsel %vm467_vm0, %v4427_v10, 0  ;;  %v4429_v3 = vld [vmem:[%s5811_s3 + $0x30] sm:$0xff]  }
 0x307   :  { %v2223_v16 = vsel %vm2215_vm6, %v2208_v12, 0.0  ;;  %4152 = vmatprep.subr.bf16.mxu0 %v4565_v1  ;;  %4133 = vmatpush3.bf16.xpose.msra.mxu1 %v2470_v0  ;;  %v2467_v11 = vsel %vm467_vm0, %v4429_v3, 0  ;;  %v2464_v12 = vsel %vm467_vm0, %v4431_v9, 0  ;;  %v4435_v15 = vld [vmem:[%s5811_s3 + $0x18] sm:$0xff]  }
 0x308   :  { %v2219_v17 = vrot.slane %v2218_v13, 2  ;;  %v2224_v19 = vrot.slane %v2223_v16, 4  ;;  %v1676_v21 = vpop.f32.mrf.mxu1  ;;  %4134 = vmatprep.subr.bf16.mxu1 %v4565_v1 }
 0x30a   :  { %v2220_v23 = vadd.f32 %v2219_v17, %v2218_v13  ;;  %v2225_v24 = vadd.f32 %v2224_v19, %v2223_v16  ;;  %v4003_v25 = vpop.f32.mrf.mxu1  ;;  %v4433_v13 = vld [vmem:[%s5811_s3 + $0x20] sm:$0xff]   ;;  %v2458_v16 = vsel %vm467_vm0, %v4435_v15, 0  ;;  %v4437_v17 = vld [vmem:[%s5811_s3 + $0x10] sm:$0xff]  }
 0x30b   :  { %v2461_v14 = vsel %vm467_vm0, %v4433_v13, 0  ;;  %v2455_v21 = vsel %vm467_vm0, %v4437_v17, 0 }
 0x30c   :  { %v2221_v26 = vrot.slane %v2220_v23, 1  ;;  %v2226_v55 = vrot.slane %v2225_v24, 2 }
 0x30e   :  { %v2222_v27 = vadd.f32 %v2221_v26, %v2220_v23  ;;  %v2227_v28 = vadd.f32 %v2226_v55, %v2225_v24  ;;  %v4439_v55 = vld [vmem:[%s5811_s3 + $0x8] sm:$0xff]  }
 0x30f   :  { %4135 = vmatpush3.bf16.xpose.msra.mxu1 %v2467_v11 }
 0x310   :  { %v2228_v59 = vrot.slane %v2227_v28, 1  ;;  %v2272_v29 = vpack.c.bf16 %v2222_v27, %v2222_v27  ;;  %4136 = vmatprep.subr.bf16.mxu1 %v4565_v1 }
 0x312   :  { %v2229_v30 = vadd.f32 %v2228_v59, %v2227_v28  ;;  %v2288_v36 = vunpack.c.l.b16 %v2272_v29  ;;  %v2452_v29 = vsel %vm467_vm0, %v4439_v55, 0  ;;  %v4430_v55 = vld [vmem:[%s5811_s3 + $0x70] sm:$0xff]  }
 0x314   :  { %v2273_v33 = vpack.c.bf16 %v2229_v30, %v2229_v30 }
 0x316   :  { %v2289_v35 = vunpack.c.l.b16 %v2273_v33 }
 0x317   :  { %4137 = vmatpush3.bf16.xpose.msra.mxu1 %v2464_v12 }
 0x318   :  { %v2297_v18 = vsel %vm2296_vm8, %v2289_v35, %v2288_v36  ;;  %4138 = vmatprep.subr.bf16.mxu1 %v4565_v1 }
 0x31f   :  { %4139 = vmatpush3.bf16.xpose.msra.mxu1 %v2461_v14 }
 0x320   :  { %4140 = vmatprep.subr.bf16.mxu1 %v4565_v1 }
 0x327   :  { %4141 = vmatpush3.bf16.xpose.msra.mxu1 %v2458_v16 }
 0x328   :  { %4142 = vmatprep.subr.bf16.mxu1 %v4565_v1 }
 0x32f   :  { %4143 = vmatpush3.bf16.xpose.msra.mxu1 %v2455_v21 }
 0x330   :  { %4144 = vmatprep.subr.bf16.mxu1 %v4565_v1 }
 0x337   :  { %4145 = vmatpush3.bf16.xpose.msra.mxu1 %v2452_v29  ;;  %v4434_v29 = vld [vmem:[%s5811_s3 + $0x60] sm:$0xff]  }
 0x338   :  { %4146 = vmatprep.subr.bf16.mxu1 %v4565_v1 }
 0x340   :  { %v1761_v20 = vpop.f32.mrf.mxu0 }
 0x341   :  { %v2209_v37 = vmul.f32 %v1761_v20, %v5385_v63 }
 0x342   :  { %v4022_v39 = vpop.f32.mrf.mxu0 }
 0x343   :  { %v2230_v40 = vsel %vm2215_vm6, %v2209_v37, 0.0 }
 0x344   :  { %v2231_v41 = vrot.slane %v2230_v40, 4  ;;  %v1764_v42 = vpop.f32.mrf.mxu0  ;;  %v1849_v43 = vpop.f32.mrf.mxu1 }
 0x345   :  { %v2210_v44 = vmul.f32 %v1849_v43, %v5385_v63 }
 0x346   :  { %v2232_v34 = vadd.f32 %v2231_v41, %v2230_v40  ;;  %v4023_v31 = vpop.f32.mrf.mxu0  ;;  %v4042_v32 = vpop.f32.mrf.mxu1 }
 0x347   :  { %v2237_v38 = vsel %vm2215_vm6, %v2210_v44, 0.0 }
 0x348   :  { %v2233_v45 = vrot.slane %v2232_v34, 2  ;;  %v2238_v46 = vrot.slane %v2237_v38, 4  ;;  %v1852_v47 = vpop.f32.mrf.mxu1 }
 0x34a   :  { %v2234_v48 = vadd.f32 %v2233_v45, %v2232_v34  ;;  %v2239_v49 = vadd.f32 %v2238_v46, %v2237_v38  ;;  %v4043_v50 = vpop.f32.mrf.mxu1 }
 0x34c   :  { %v2235_v51 = vrot.slane %v2234_v48, 1  ;;  %v2240_v52 = vrot.slane %v2239_v49, 2 }
 0x34e   :  { %v2236_v53 = vadd.f32 %v2235_v51, %v2234_v48  ;;  %v2241_v54 = vadd.f32 %v2240_v52, %v2239_v49 }
 0x350   :  { %v2274_v56 = vpack.c.bf16 %v2236_v53, %v2236_v53  ;;  %v2242_v57 = vrot.slane %v2241_v54, 1 }
 0x352   :  { %v2290_v60 = vunpack.c.l.b16 %v2274_v56  ;;  %v2243_v61 = vadd.f32 %v2242_v57, %v2241_v54 }
 0x354   :  { %v2299_v62 = vsel %vm2298_vm9, %v2290_v60, %v2297_v18  ;;  %v2275_v8 = vpack.c.bf16 %v2243_v61, %v2243_v61 }
 0x356   :  { %v2291_v5 = vunpack.c.l.b16 %v2275_v8 }
 0x358   :  { %v5410_v6 = vsel %vm2300_vm10, %v2291_v5, %v2299_v62 }
 0x380   :  { %v1937_v19 = vpop.f32.mrf.mxu0 }
 0x381   :  { %v2025_v23 = vpop.f32.mrf.mxu1  ;;  %v2211_v30 = vmul.f32 %v1937_v19, %v5385_v63  ;;  %v4428_v19 = vld [vmem:[%s5811_s3 + $0x78] sm:$0xff]  }
 0x382   :  { %v4062_v24 = vpop.f32.mrf.mxu0  ;;  %v2212_v33 = vmul.f32 %v2025_v23, %v5385_v63 }
 0x383   :  { %v4082_v25 = vpop.f32.mrf.mxu1  ;;  %v2244_v36 = vsel %vm2215_vm6, %v2211_v30, 0.0  ;;  %v2573_v30 = vsel %vm467_vm0, %v4434_v29, 0 }
 0x384   :  { %v1940_v26 = vpop.f32.mrf.mxu0  ;;  %v2245_v35 = vrot.slane %v2244_v36, 4  ;;  %v2251_v18 = vsel %vm2215_vm6, %v2212_v33, 0.0  ;;  %v4436_v33 = vld [vmem:[%s5811_s3 + $0x58] sm:$0xff]  }
 0x385   :  { %v2028_v27 = vpop.f32.mrf.mxu1  ;;  %v2252_v20 = vrot.slane %v2251_v18, 4 }
 0x386   :  { %v4063_v28 = vpop.f32.mrf.mxu0  ;;  %v2246_v37 = vadd.f32 %v2245_v35, %v2244_v36  ;;  %v2579_v27 = vsel %vm467_vm0, %v4430_v55, 0  ;;  %v2570_v36 = vsel %vm467_vm0, %v4436_v33, 0  ;;  %v4438_v35 = vld [vmem:[%s5811_s3 + $0x50] sm:$0xff]  }
 0x387   :  { %v4083_v59 = vpop.f32.mrf.mxu1  ;;  %v2253_v39 = vadd.f32 %v2252_v20, %v2251_v18  ;;  %v4432_v28 = vld [vmem:[%s5811_s3 + $0x68] sm:$0xff]   ;;  %v2567_v18 = vsel %vm467_vm0, %v4438_v35, 0 }
 0x388   :  { %v2247_v40 = vrot.slane %v2246_v37, 2  ;;  %v2576_v59 = vsel %vm467_vm0, %v4432_v28, 0  ;;  %v4440_v20 = vld [vmem:[%s5811_s3 + $0x48] sm:$0xff]  }
 0x389   :  { %v2254_v41 = vrot.slane %v2253_v39, 2 }
 0x38a   :  { %v2248_v42 = vadd.f32 %v2247_v40, %v2246_v37  ;;  %v2564_v37 = vsel %vm467_vm0, %v4440_v20, 0  ;;  %v4461_v20 = vld [vmem:[%s5811_s3 + $0x130] sm:$0xff]  }
 0x38b   :  { %v2255_v43 = vadd.f32 %v2254_v41, %v2253_v39  ;;  %v4441_v39 = vld [vmem:[%s5811_s3] sm:$0xff]  }
 0x38c   :  { %v2249_v44 = vrot.slane %v2248_v42, 1  ;;  %v2449_v40 = vsel %vm467_vm0, %v4441_v39, 0  ;;  %v4442_v41 = vld [vmem:[%s5811_s3 + $0x40] sm:$0xff]   ;;  %v2915_v39 = vsel %vm467_vm0, %v4461_v20, 0 }
 0x38d   :  { %v2256_v46 = vrot.slane %v2255_v43, 1  ;;  %4147 = vmatpush3.bf16.xpose.msra.mxu1 %v2449_v40 }
 0x38e   :  { %v2250_v49 = vadd.f32 %v2249_v44, %v2248_v42  ;;  %v2561_v42 = vsel %vm467_vm0, %v4442_v41, 0  ;;  %4172 = vmatprep.subr.bf16.mxu1 %v4565_v1  ;;  %v4463_v41 = vld [vmem:[%s5811_s3 + $0x128] sm:$0xff]  }
 0x38f   :  { %v2257_v58 = vadd.f32 %v2256_v46, %v2255_v43 }
 0x390   :  { %v2276_v62 = vpack.c.bf16 %v2250_v49, %v2250_v49  ;;  %v4444_v49 = vld [vmem:[%s5811_s3 + $0xf8] sm:$0xff]  }
 0x391   :  { %v2277_v5 = vpack.c.bf16 %v2257_v58, %v2257_v58 }
 0x392   :  { %v2292_v0 = vunpack.c.l.b16 %v2276_v62  ;;  %v4448_v62 = vld [vmem:[%s5811_s3 + $0xe8] sm:$0xff]  }
 0x393   :  { %v2293_v12 = vunpack.c.l.b16 %v2277_v5  ;;  %v4450_v5 = vld [vmem:[%s5811_s3 + $0xe0] sm:$0xff]  }
 0x394   :  { %v2303_v14 = vsel %vm2302_vm11, %v2292_v0, %v5410_v6  ;;  %v2582_v6 = vsel %vm467_vm0, %v4428_v19, 0  ;;  %v2797_v0 = vsel %vm467_vm0, %v4450_v5, 0  ;;  %v4456_v19 = vld [vmem:[%s5811_s3 + $0xc8] sm:$0xff]  }
 0x395   :  { %v2305_v21 = vsel %vm2304_vm12, %v2293_v12, %v2303_v14  ;;  %v4454_v14 = vld [vmem:[%s5811_s3 + $0xd0] sm:$0xff]  }
 0x3c0   :  { %v2113_v34 = vpop.f32.mrf.mxu0 }
 0x3c1   :  { %v2213_v31 = vmul.f32 %v2113_v34, %v5385_v63  ;;  %v2201_v32 = vpop.f32.mrf.mxu1 }
 0x3c2   :  { %v2214_v38 = vmul.f32 %v2201_v32, %v5385_v63  ;;  %v4102_v45 = vpop.f32.mrf.mxu0 }
 0x3c3   :  { %v2258_v47 = vsel %vm2215_vm6, %v2213_v31, 0.0  ;;  %v4122_v48 = vpop.f32.mrf.mxu1  ;;  %v4443_v45 = vld [vmem:[%s5811_s3 + $0xb8] sm:$0xff]  }
 0x3c4   :  { %v2259_v50 = vrot.slane %v2258_v47, 4  ;;  %v2265_v51 = vsel %vm2215_vm6, %v2214_v38, 0.0  ;;  %v2116_v52 = vpop.f32.mrf.mxu0 }
 0x3c5   :  { %v2266_v53 = vrot.slane %v2265_v51, 4  ;;  %v2204_v54 = vpop.f32.mrf.mxu1 }
 0x3c6   :  { %v2260_v56 = vadd.f32 %v2259_v50, %v2258_v47  ;;  %v4103_v57 = vpop.f32.mrf.mxu0  ;;  %v2806_v54 = vsel %vm467_vm0, %v4444_v49, 0 }
 0x3c7   :  { %v2267_v60 = vadd.f32 %v2266_v53, %v2265_v51  ;;  %v4123_v61 = vpop.f32.mrf.mxu1  ;;  %v2694_v51 = vsel %vm467_vm0, %v4443_v45, 0  ;;  %v4446_v57 = vld [vmem:[%s5811_s3 + $0xf0] sm:$0xff]  }
 0x3c8   :  { %v2261_v8 = vrot.slane %v2260_v56, 2  ;;  %v4447_v61 = vld [vmem:[%s5811_s3 + $0xa8] sm:$0xff]  }
 0x3c9   :  { %v2268_v63 = vrot.slane %v2267_v60, 2 }
 0x3ca   :  { %v2262_v4 = vadd.f32 %v2261_v8, %v2260_v56  ;;  %v4445_v56 = vld [vmem:[%s5811_s3 + $0xb0] sm:$0xff]   ;;  %v2688_v8 = vsel %vm467_vm0, %v4447_v61, 0 }
 0x3cb   :  { %v2269_v10 = vadd.f32 %v2268_v63, %v2267_v60  ;;  %v2691_v58 = vsel %vm467_vm0, %v4445_v56, 0  ;;  %v2803_v60 = vsel %vm467_vm0, %v4446_v57, 0  ;;  %v2800_v63 = vsel %vm467_vm0, %v4448_v62, 0  ;;  %v4472_v56 = vld [vmem:[%s5811_s3 + $0x148] sm:$0xff]   ;;  %v4474_v62 = vld [vmem:[%s5811_s3 + $0x140] sm:$0xff]  }
 0x3cc   :  { %v2263_v3 = vrot.slane %v2262_v4, 1 }
 0x3cd   :  { %v2270_v11 = vrot.slane %v2269_v10, 1 }
 0x3ce   :  { %v2264_v9 = vadd.f32 %v2263_v3, %v2262_v4  ;;  %v4449_v4 = vld [vmem:[%s5811_s3 + $0xa0] sm:$0xff]   ;;  %v4451_v3 = vld [vmem:[%s5811_s3 + $0x98] sm:$0xff]  }
 0x3cf   :  { %v2271_v13 = vadd.f32 %v2270_v11, %v2269_v10  ;;  %v2685_v10 = vsel %vm467_vm0, %v4449_v4, 0  ;;  %v4452_v11 = vld [vmem:[%s5811_s3 + $0xd8] sm:$0xff]   ;;  %v3009_v4 = vsel %vm467_vm0, %v4474_v62, 0 }
 0x3d0   :  { %v2278_v15 = vpack.c.bf16 %v2264_v9, %v2264_v9  ;;  %v2682_v9 = vsel %vm467_vm0, %v4451_v3, 0  ;;  %v2794_v12 = vsel %vm467_vm0, %v4452_v11, 0 }
 0x3d1   :  { %v2279_v16 = vpack.c.bf16 %v2271_v13, %v2271_v13  ;;  %v4453_v13 = vld [vmem:[%s5811_s3 + $0x90] sm:$0xff]  }
 0x3d2   :  { %v2294_v17 = vunpack.c.l.b16 %v2278_v15  ;;  %v2679_v15 = vsel %vm467_vm0, %v4453_v13, 0  ;;  %v4477_v13 = vld [vmem:[%s5811_s3 + $0x1b0] sm:$0xff]  }
 0x3d3   :  { %v2295_v23 = vunpack.c.l.b16 %v2279_v16  ;;  %v2791_v16 = vsel %vm467_vm0, %v4454_v14, 0  ;;  %v4478_v14 = vld [vmem:[%s5811_s3 + $0x1f0] sm:$0xff]  }
 0x3d4   :  { %v2307_v24 = vsel %vm2306_vm13, %v2294_v17, %v2305_v21  ;;  %v4455_v17 = vld [vmem:[%s5811_s3 + $0x88] sm:$0xff]  }
 0x3d5   :  { %v2309_v25 = vsel %vm2308_vm14, %v2295_v23, %v2307_v24  ;;  %v2676_v21 = vsel %vm467_vm0, %v4455_v17, 0  ;;  %v2788_v24 = vsel %vm467_vm0, %v4456_v19, 0  ;;  %v4479_v17 = vld [vmem:[%s5811_s3 + $0x1a8] sm:$0xff]  }
 0x3d6   :  { %v2310_v26 = vpack.c.b16 %v2309_v25, %v2309_v25  ;;  %v4457_v25 = vld [vmem:[%s5811_s3 + $0x80] sm:$0xff]   ;;  %v4480_v19 = vld [vmem:[%s5811_s3 + $0x1e8] sm:$0xff]  }
 0x3d7   :  { %v2673_v55 = vsel %vm467_vm0, %v4457_v25, 0  ;;  %v4482_v25 = vld [vmem:[%s5811_s3 + $0x1e0] sm:$0xff]  }
 0x3d8   :  { %4129 = vmatmul.mubr.msk.bf16.vlgmr.msra.gmra.mxu0 %vm467_vm0, %v2310_v26 }
 0x3d9   :  { %4153 = vmatpush3.bf16.xpose.msra.mxu0 %v2582_v6  ;;  %4168 = vmatprep.mubr.msk.bf16.mxu0 %vm4566_vm1, %v4565_v1  ;;  %v4458_v6 = vld [vmem:[%s5811_s3 + $0xc0] sm:$0xff]  }
 0x3da   :  { %4154 = vmatprep.subr.bf16.mxu0 %v4565_v1  ;;  %v2785_v28 = vsel %vm467_vm0, %v4458_v6, 0 }
 0x3e1   :  { %4155 = vmatpush3.bf16.xpose.msra.mxu0 %v2579_v27 }
 0x3e2   :  { %4156 = vmatprep.subr.bf16.mxu0 %v4565_v1 }
 0x3e9   :  { %4157 = vmatpush3.bf16.xpose.msra.mxu0 %v2576_v59 }
 0x3ea   :  { %4158 = vmatprep.subr.bf16.mxu0 %v4565_v1 }
 0x3f1   :  { %4159 = vmatpush3.bf16.xpose.msra.mxu0 %v2573_v30  ;;  %v4460_v30 = vld [vmem:[%s5811_s3 + $0x178] sm:$0xff]  }
 0x3f2   :  { %4160 = vmatprep.subr.bf16.mxu0 %v4565_v1 }
 0x3f9   :  { %4161 = vmatpush3.bf16.xpose.msra.mxu0 %v2570_v36 }
 0x3fa   :  { %4162 = vmatprep.subr.bf16.mxu0 %v4565_v1 }
 0x401   :  { %4163 = vmatpush3.bf16.xpose.msra.mxu0 %v2567_v18  ;;  %v3030_v18 = vsel %vm467_vm0, %v4460_v30, 0  ;;  %v4486_v30 = vld [vmem:[%s5811_s3 + $0x1d0] sm:$0xff]  }
 0x402   :  { %4164 = vmatprep.subr.bf16.mxu0 %v4565_v1 }
 0x409   :  { %4165 = vmatpush3.bf16.xpose.msra.mxu0 %v2564_v37  ;;  %v4462_v37 = vld [vmem:[%s5811_s3 + $0x170] sm:$0xff]  }
 0x40a   :  { %4166 = vmatprep.subr.bf16.mxu0 %v4565_v1  ;;  %v3027_v40 = vsel %vm467_vm0, %v4462_v37, 0 }
 0x411   :  { %4167 = vmatpush3.bf16.xpose.msra.mxu0 %v2561_v42  ;;  %v4464_v42 = vld [vmem:[%s5811_s3 + $0x168] sm:$0xff]  }
 0x412   :  { %4192 = vmatprep.subr.bf16.mxu0 %v4565_v1 }
 0x498   :  { %v2360_v43 = vpop.f32.mrf.mxu0 }
 0x499   :  { %v2366_v44 = vpack.c.bf16 %v2360_v43, %v2360_v43  ;;  %v2912_v43 = vsel %vm467_vm0, %v4463_v41, 0  ;;  %v4490_v41 = vld [vmem:[%s5811_s3 + $0x1c0] sm:$0xff]  }
 0x49a   :  { %v4130_v34 = vpop.f32.mrf.mxu0 }
 0x49b   :  { %v5509_v31 = vrot.slane %v2366_v44, %v4956_v7  ;;  %v3024_v44 = vsel %vm467_vm0, %v4464_v42, 0  ;;  %v4465_v34 = vld [vmem:[%s5811_s3 + $0x120] sm:$0xff]  }
 0x49c   :  { %v2363_v32 = vpop.f32.mrf.mxu0 }
 0x49d   :  { %v5513_v38 = vrot.slane %v5509_v31, %v4956_v7  ;;  %v2375_v23 = vcombine.high %v5509_v31, %v5509_v31  ;;  %v4466_v31 = vld [vmem:[%s5811_s3 + $0x160] sm:$0xff]   ;;  %v2909_v32 = vsel %vm467_vm0, %v4465_v34, 0 }
 0x49e   :  { %v4131_v46 = vpop.f32.mrf.mxu0  ;;  %v3021_v45 = vsel %vm467_vm0, %v4466_v31, 0 }
 0x49f   :  { %v2393_v47 = vunpack.i.h.s16 %v5513_v38  ;;  %v3509_v48 = vpack.i.b16 %v5513_v38, %v5513_v38  ;;  %v5601_v26 = vrot.slane %v2375_v23, %v4956_v7  ;;  %v4459_v7 = vld [vmem:[%s5811_s3 + $0x138] sm:$0xff]   ;;  %v2390_v61 = vcombine.high %v5513_v38, %v5513_v38 }
 0x4a0   :  { %v2918_v36 = vsel %vm467_vm0, %v4459_v7, 0  ;;  %v4467_v46 = vld [vmem:[%s5811_s3 + $0x118] sm:$0xff]   ;;  %v3248_v23 = vsel %vm467_vm0, %v4480_v19, 0 }
 0x4a1   :  { %v2404_v50 = vrot.slane %v3509_v48, %v4987_v22  ;;  %v2512_v52 = vpack.i.b16 %v2393_v47, %v2393_v47  ;;  %v2395_v27 = vunpack.i.h.s16 %v5601_v26  ;;  %v3528_v59 = vpack.i.b16 %v5601_v26, %v5601_v26  ;;  %v4468_v47 = vld [vmem:[%s5811_s3 + $0x158] sm:$0xff]  }
 0x4a2   :  { %v2906_v48 = vsel %vm467_vm0, %v4467_v46, 0  ;;  %v3018_v49 = vsel %vm467_vm0, %v4468_v47, 0  ;;  %v3547_v5 = vpack.i.b16 %v2390_v61, %v2390_v61 }
 0x4a3   :  { %4149 = vmatmul.mubr.msk.bf16.vlgmr.msra.gmra.mxu1 %vm467_vm0, %v2404_v50  ;;  %v2516_v53 = vrot.slane %v2512_v52, %v4987_v22  ;;  %v2736_v29 = vpack.i.b16 %v2395_v27, %v2395_v27  ;;  %v2628_v33 = vrot.slane %v3528_v59, %v4987_v22  ;;  %v4469_v50 = vld [vmem:[%s5811_s3 + $0x110] sm:$0xff]   ;;  %v4483_v27 = vld [vmem:[%s5811_s3 + $0x198] sm:$0xff]  }
 0x4a4   :  { %4173 = vmatpush3.bf16.xpose.msra.mxu1 %v2694_v51  ;;  %4188 = vmatprep.mubr.msk.bf16.mxu1 %vm4566_vm1, %v4565_v1  ;;  %v4470_v51 = vld [vmem:[%s5811_s3 + $0x150] sm:$0xff]   ;;  %v2903_v52 = vsel %vm467_vm0, %v4469_v50, 0  ;;  %v2852_v3 = vrot.slane %v3547_v5, %v4987_v22  ;;  %v3130_v59 = vsel %vm467_vm0, %v4483_v27, 0 }
 0x4a5   :  { %4174 = vmatprep.subr.bf16.mxu1 %v4565_v1  ;;  %4169 = vmatmul.mubr.msk.bf16.vlgmr.msra.gmra.mxu0 %vm467_vm0, %v2516_v53  ;;  %v2740_v35 = vrot.slane %v2736_v29, %v4987_v22  ;;  %v3015_v53 = vsel %vm467_vm0, %v4470_v51, 0  ;;  %v4485_v29 = vld [vmem:[%s5811_s3 + $0x190] sm:$0xff]  }
 0x4a6   :  { %4193 = vmatpush3.bf16.xpose.msra.mxu0 %v2806_v54  ;;  %4208 = vmatprep.mubr.msk.bf16.mxu0 %vm4566_vm1, %v4565_v1  ;;  %v4471_v54 = vld [vmem:[%s5811_s3 + $0x108] sm:$0xff]  }
 0x4a7   :  { %4194 = vmatprep.subr.bf16.mxu0 %v4565_v1  ;;  %v2900_v57 = vsel %vm467_vm0, %v4471_v54, 0 }
 0x4ac   :  { %4175 = vmatpush3.bf16.xpose.msra.mxu1 %v2691_v58  ;;  %v3012_v58 = vsel %vm467_vm0, %v4472_v56, 0 }
 0x4ad   :  { %4176 = vmatprep.subr.bf16.mxu1 %v4565_v1 }
 0x4ae   :  { %4195 = vmatpush3.bf16.xpose.msra.mxu0 %v2803_v60  ;;  %v4473_v60 = vld [vmem:[%s5811_s3 + $0x100] sm:$0xff]  }
 0x4af   :  { %4196 = vmatprep.subr.bf16.mxu0 %v4565_v1 }
 0x4b4   :  { %4177 = vmatpush3.bf16.xpose.msra.mxu1 %v2688_v8  ;;  %v2897_v8 = vsel %vm467_vm0, %v4473_v60, 0 }
 0x4b5   :  { %4178 = vmatprep.subr.bf16.mxu1 %v4565_v1 }
 0x4b6   :  { %4197 = vmatpush3.bf16.xpose.msra.mxu0 %v2800_v63  ;;  %v2397_v63 = vunpack.i.h.s16 %v2390_v61 }
 0x4b7   :  { %4198 = vmatprep.subr.bf16.mxu0 %v4565_v1 }
 0x4b8   :  { %v2960_v38 = vpack.i.b16 %v2397_v63, %v2397_v63 }
 0x4bc   :  { %4179 = vmatpush3.bf16.xpose.msra.mxu1 %v2685_v10  ;;  %v4475_v10 = vld [vmem:[%s5811_s3 + $0x1b8] sm:$0xff]  }
 0x4bd   :  { %4180 = vmatprep.subr.bf16.mxu1 %v4565_v1  ;;  %v3142_v11 = vsel %vm467_vm0, %v4475_v10, 0 }
 0x4be   :  { %4199 = vmatpush3.bf16.xpose.msra.mxu0 %v2797_v0  ;;  %v4476_v0 = vld [vmem:[%s5811_s3 + $0x1f8] sm:$0xff]  }
 0x4bf   :  { %4200 = vmatprep.subr.bf16.mxu0 %v4565_v1 }
 0x4c4   :  { %4181 = vmatpush3.bf16.xpose.msra.mxu1 %v2682_v9  ;;  %v2964_v9 = vrot.slane %v2960_v38, %v4987_v22 }
 0x4c5   :  { %4182 = vmatprep.subr.bf16.mxu1 %v4565_v1 }
 0x4c6   :  { %4201 = vmatpush3.bf16.xpose.msra.mxu0 %v2794_v12  ;;  %v3254_v12 = vsel %vm467_vm0, %v4476_v0, 0 }
 0x4c7   :  { %4202 = vmatprep.subr.bf16.mxu0 %v4565_v1 }
 0x4cc   :  { %4183 = vmatpush3.bf16.xpose.msra.mxu1 %v2679_v15  ;;  %v3139_v15 = vsel %vm467_vm0, %v4477_v13, 0 }
 0x4cd   :  { %4184 = vmatprep.subr.bf16.mxu1 %v4565_v1 }
 0x4ce   :  { %4203 = vmatpush3.bf16.xpose.msra.mxu0 %v2791_v16  ;;  %v3251_v16 = vsel %vm467_vm0, %v4478_v14, 0 }
 0x4cf   :  { %4204 = vmatprep.subr.bf16.mxu0 %v4565_v1 }
 0x4d4   :  { %4185 = vmatpush3.bf16.xpose.msra.mxu1 %v2676_v21  ;;  %v3136_v21 = vsel %vm467_vm0, %v4479_v17, 0 }
 0x4d5   :  { %4186 = vmatprep.subr.bf16.mxu1 %v4565_v1 }
 0x4d6   :  { %4205 = vmatpush3.bf16.xpose.msra.mxu0 %v2788_v24  ;;  %v4481_v24 = vld [vmem:[%s5811_s3 + $0x1a0] sm:$0xff]  }
 0x4d7   :  { %4206 = vmatprep.subr.bf16.mxu0 %v4565_v1  ;;  %v3133_v6 = vsel %vm467_vm0, %v4481_v24, 0 }
 0x4dc   :  { %4187 = vmatpush3.bf16.xpose.msra.mxu1 %v2673_v55  ;;  %v3245_v55 = vsel %vm467_vm0, %v4482_v25, 0 }
 0x4dd   :  { %4212 = vmatprep.subr.bf16.mxu1 %v4565_v1 }
 0x4de   :  { %4207 = vmatpush3.bf16.xpose.msra.mxu0 %v2785_v28  ;;  %v4484_v28 = vld [vmem:[%s5811_s3 + $0x1d8] sm:$0xff]  }
 0x4df   :  { %4232 = vmatprep.subr.bf16.mxu0 %v4565_v1  ;;  %v3242_v7 = vsel %vm467_vm0, %v4484_v28, 0 }
 0x4e3   :  { %4189 = vmatmul.mubr.msk.bf16.vlgmr.msra.gmra.mxu1 %vm467_vm0, %v2628_v33  ;;  %v3127_v33 = vsel %vm467_vm0, %v4485_v29, 0 }
 0x4e4   :  { %4213 = vmatpush3.bf16.xpose.msra.mxu1 %v2918_v36  ;;  %4228 = vmatprep.mubr.msk.bf16.mxu1 %vm4566_vm1, %v4565_v1  ;;  %v3239_v36 = vsel %vm467_vm0, %v4486_v30, 0 }
 0x4e5   :  { %4214 = vmatprep.subr.bf16.mxu1 %v4565_v1  ;;  %4209 = vmatmul.mubr.msk.bf16.vlgmr.msra.gmra.mxu0 %vm467_vm0, %v2740_v35  ;;  %v4487_v35 = vld [vmem:[%s5811_s3 + $0x188] sm:$0xff]  }
 0x4e6   :  { %4233 = vmatpush3.bf16.xpose.msra.mxu0 %v3030_v18  ;;  %4248 = vmatprep.mubr.msk.bf16.mxu0 %vm4566_vm1, %v4565_v1  ;;  %v4488_v18 = vld [vmem:[%s5811_s3 + $0x1c8] sm:$0xff]   ;;  %v3124_v20 = vsel %vm467_vm0, %v4487_v35, 0 }
 0x4e7   :  { %4234 = vmatprep.subr.bf16.mxu0 %v4565_v1  ;;  %v3236_v37 = vsel %vm467_vm0, %v4488_v18, 0 }
 0x4ec   :  { %4215 = vmatpush3.bf16.xpose.msra.mxu1 %v2915_v39  ;;  %v4489_v39 = vld [vmem:[%s5811_s3 + $0x180] sm:$0xff]   ;;  %s4569_s3 = smov [#allocation2]  }
 0x4ed   :  { %4216 = vmatprep.subr.bf16.mxu1 %v4565_v1  ;;  %v3121_v42 = vsel %vm467_vm0, %v4489_v39, 0  ;;  %s3362_s19 = sshll.u32 %s4569_s3, 4  ;;  %s3363_s19 = int_to_ptr.vmem [resolvable:$true] %s3362_s19 }
 0x4ee   :  { %4235 = vmatpush3.bf16.xpose.msra.mxu0 %v3027_v40  ;;  %v2391_v40 = vcombine.high %v5601_v26, %v5601_v26  ;;  %s4543_s4 = scalar_lea.vmem %s3363_s19, 128  ;;  %p4548_p1 = scmp.lt.s32.totalorder %s3363_s19, %s3363_s19 }
 0x4ef   :  { %4236 = vmatprep.subr.bf16.mxu0 %v4565_v1  ;;  %p4544_p0 = scmp.ne.s32.totalorder %s3363_s19, %s4543_s4  ;;  %p4549_p2 = scmp.lt.s32.totalorder %s4543_s4, %s4543_s4 }
 0x4f0   :  { %v3566_v34 = vpack.i.b16 %v2391_v40, %v2391_v40 }
 0x4f1   :  { %p4550_p3 = por %p4549_p2, %p4548_p1 }
 0x4f3   :  { %p4551_p4 = pnand %p4550_p3, %p4544_p0 }
 0x4f4   :  { %4217 = vmatpush3.bf16.xpose.msra.mxu1 %v2912_v43  ;;  %v2399_v43 = vunpack.i.h.s16 %v2391_v40 }
 0x4f5   :  { %4218 = vmatprep.subr.bf16.mxu1 %v4565_v1 }
 0x4f6   :  { %4237 = vmatpush3.bf16.xpose.msra.mxu0 %v3024_v44  ;;  %v3233_v44 = vsel %vm467_vm0, %v4490_v41, 0  ;;  %v3184_v31 = vpack.i.b16 %v2399_v43, %v2399_v43 }
 0x4f7   :  { %4238 = vmatprep.subr.bf16.mxu0 %v4565_v1 }
 0x4fc   :  { %4219 = vmatpush3.bf16.xpose.msra.mxu1 %v2909_v32  ;;  %v3076_v32 = vrot.slane %v3566_v34, %v4987_v22 }
 0x4fd   :  { %4220 = vmatprep.subr.bf16.mxu1 %v4565_v1 }
 0x4fe   :  { %4239 = vmatpush3.bf16.xpose.msra.mxu0 %v3021_v45 }
 0x4ff   :  { %4240 = vmatprep.subr.bf16.mxu0 %v4565_v1 }
 0x504   :  { %4221 = vmatpush3.bf16.xpose.msra.mxu1 %v2906_v48 }
 0x505   :  { %4222 = vmatprep.subr.bf16.mxu1 %v4565_v1 }
 0x506   :  { %4241 = vmatpush3.bf16.xpose.msra.mxu0 %v3018_v49 }
 0x507   :  { %4242 = vmatprep.subr.bf16.mxu0 %v4565_v1 }
 0x50c   :  { %4223 = vmatpush3.bf16.xpose.msra.mxu1 %v2903_v52 }
 0x50d   :  { %4224 = vmatprep.subr.bf16.mxu1 %v4565_v1 }
 0x50e   :  { %4243 = vmatpush3.bf16.xpose.msra.mxu0 %v3015_v53 }
 0x50f   :  { %4244 = vmatprep.subr.bf16.mxu0 %v4565_v1 }
 0x514   :  { %4225 = vmatpush3.bf16.xpose.msra.mxu1 %v2900_v57 }
 0x515   :  { %4226 = vmatprep.subr.bf16.mxu1 %v4565_v1 }
 0x516   :  { %4245 = vmatpush3.bf16.xpose.msra.mxu0 %v3012_v58 }
 0x517   :  { %4246 = vmatprep.subr.bf16.mxu0 %v4565_v1 }
 0x51c   :  { %4227 = vmatpush3.bf16.xpose.msra.mxu1 %v2897_v8 }
 0x51d   :  { %4252 = vmatprep.subr.bf16.mxu1 %v4565_v1 }
 0x51e   :  { %4247 = vmatpush3.bf16.xpose.msra.mxu0 %v3009_v4 }
 0x51f   :  { %4272 = vmatprep.subr.bf16.mxu0 %v4565_v1 }
 0x523   :  { %4229 = vmatmul.mubr.msk.bf16.vlgmr.msra.gmra.mxu1 %vm467_vm0, %v2852_v3 }
 0x524   :  { %4253 = vmatpush3.bf16.xpose.msra.mxu1 %v3142_v11  ;;  %4268 = vmatprep.mubr.msk.bf16.mxu1 %vm4566_vm1, %v4565_v1 }
 0x525   :  { %4254 = vmatprep.subr.bf16.mxu1 %v4565_v1  ;;  %4249 = vmatmul.mubr.msk.bf16.vlgmr.msra.gmra.mxu0 %vm467_vm0, %v2964_v9 }
 0x526   :  { %4273 = vmatpush3.bf16.xpose.msra.mxu0 %v3254_v12  ;;  %4288 = vmatprep.mubr.msk.bf16.mxu0 %vm4566_vm1, %v4565_v1 }
 0x527   :  { %4274 = vmatprep.subr.bf16.mxu0 %v4565_v1 }
 0x52c   :  { %4255 = vmatpush3.bf16.xpose.msra.mxu1 %v3139_v15 }
 0x52d   :  { %4256 = vmatprep.subr.bf16.mxu1 %v4565_v1 }
 0x52e   :  { %4275 = vmatpush3.bf16.xpose.msra.mxu0 %v3251_v16 }
 0x52f   :  { %4276 = vmatprep.subr.bf16.mxu0 %v4565_v1 }
 0x534   :  { %4257 = vmatpush3.bf16.xpose.msra.mxu1 %v3136_v21 }
 0x535   :  { %4258 = vmatprep.subr.bf16.mxu1 %v4565_v1 }
 0x536   :  { %4277 = vmatpush3.bf16.xpose.msra.mxu0 %v3248_v23 }
 0x537   :  { %4278 = vmatprep.subr.bf16.mxu0 %v4565_v1 }
 0x53c   :  { %4259 = vmatpush3.bf16.xpose.msra.mxu1 %v3133_v6 }
 0x53d   :  { %4260 = vmatprep.subr.bf16.mxu1 %v4565_v1 }
 0x53e   :  { %4279 = vmatpush3.bf16.xpose.msra.mxu0 %v3245_v55 }
 0x53f   :  { %4280 = vmatprep.subr.bf16.mxu0 %v4565_v1 }
 0x544   :  { %4261 = vmatpush3.bf16.xpose.msra.mxu1 %v3130_v59 }
 0x545   :  { %4262 = vmatprep.subr.bf16.mxu1 %v4565_v1 }
 0x546   :  { %4281 = vmatpush3.bf16.xpose.msra.mxu0 %v3242_v7 }
 0x547   :  { %4282 = vmatprep.subr.bf16.mxu0 %v4565_v1 }
 0x54c   :  { %4263 = vmatpush3.bf16.xpose.msra.mxu1 %v3127_v33 }
 0x54d   :  { %4264 = vmatprep.subr.bf16.mxu1 %v4565_v1 }
 0x54e   :  { %4283 = vmatpush3.bf16.xpose.msra.mxu0 %v3239_v36 }
 0x54f   :  { %4284 = vmatprep.subr.bf16.mxu0 %v4565_v1 }
 0x554   :  { %4265 = vmatpush3.bf16.xpose.msra.mxu1 %v3124_v20 }
 0x555   :  { %4266 = vmatprep.subr.bf16.mxu1 %v4565_v1 }
 0x556   :  { %4285 = vmatpush3.bf16.xpose.msra.mxu0 %v3236_v37 }
 0x557   :  { %4286 = vmatprep.subr.bf16.mxu0 %v4565_v1  ;;  %v3188_v1 = vrot.slane %v3184_v31, %v4987_v22 }
 0x55c   :  { %4267 = vmatpush3.bf16.xpose.msra.mxu1 %v3121_v42 }
 0x55e   :  { %4287 = vmatpush3.bf16.xpose.msra.mxu0 %v3233_v44 }
 0x563   :  { %4269 = vmatmul.mubr.msk.bf16.vlgmr.msra.gmra.mxu1 %vm467_vm0, %v3076_v32  ;;  %v2506_v26 = vpop.f32.mrf.mxu1 }
 0x564   :  { %v3296_v45 = vmul.f32 0.17677669, %v2506_v26 }
 0x565   :  { %v4150_v46 = vpop.f32.mrf.mxu1  ;;  %4289 = vmatmul.mubr.msk.bf16.vlgmr.msra.gmra.mxu0 %vm467_vm0, %v3188_v1  ;;  %v2618_v47 = vpop.f32.mrf.mxu0 }
 0x566   :  { %v3297_v48 = vmul.f32 0.17677669, %v2618_v47  ;;  %4523 = vtanh.f32 %v3296_v45 }
 0x567   :  { %v2509_v49 = vpop.f32.mrf.mxu1  ;;  %v4170_v50 = vpop.f32.mrf.mxu0 }
 0x568   :  { %4525 = vtanh.f32 %v3297_v48 }
 0x569   :  { %v4151_v51 = vpop.f32.mrf.mxu1  ;;  %v2621_v52 = vpop.f32.mrf.mxu0 }
 0x56b   :  { %v4171_v53 = vpop.f32.mrf.mxu0 }
 0x573   :  { %v4524_v54 = vpop.eup %4523 }
 0x574   :  { %v3312_v58 = vmul.f32 10.0, %v4524_v54 }
 0x575   :  { %v4526_v56 = vpop.eup %4525 }
 0x576   :  { %v3313_v57 = vmul.f32 10.0, %v4526_v56 }
 0x578   :  { %v3328_v60 = vrot.slane %v3313_v57, 7 }
 0x57a   :  { %v3329_v61 = vsel %vm2296_vm8, %v3328_v60, %v3312_v58 }
 0x5a3   :  { %v2730_v22 = vpop.f32.mrf.mxu1 }
 0x5a4   :  { %v3298_v62 = vmul.f32 0.17677669, %v2730_v22 }
 0x5a5   :  { %v4190_v8 = vpop.f32.mrf.mxu1  ;;  %v2842_v63 = vpop.f32.mrf.mxu0 }
 0x5a6   :  { %4527 = vtanh.f32 %v3298_v62  ;;  %v3299_v4 = vmul.f32 0.17677669, %v2842_v63 }
 0x5a7   :  { %v2733_v5 = vpop.f32.mrf.mxu1  ;;  %v4210_v10 = vpop.f32.mrf.mxu0 }
 0x5a8   :  { %4529 = vtanh.f32 %v3299_v4 }
 0x5a9   :  { %v4191_v38 = vpop.f32.mrf.mxu1  ;;  %v2845_v0 = vpop.f32.mrf.mxu0 }
 0x5ab   :  { %v4211_v3 = vpop.f32.mrf.mxu0 }
 0x5b3   :  { %v4528_v11 = vpop.eup %4527 }
 0x5b4   :  { %v3314_v9 = vmul.f32 10.0, %v4528_v11 }
 0x5b5   :  { %v4530_v12 = vpop.eup %4529 }
 0x5b6   :  { %v3330_v13 = vrot.slane %v3314_v9, 6  ;;  %v3315_v14 = vmul.f32 10.0, %v4530_v12 }
 0x5b8   :  { %v3331_v15 = vsel %vm2298_vm9, %v3330_v13, %v3329_v61  ;;  %v3332_v16 = vrot.slane %v3315_v14, 5 }
 0x5ba   :  { %v3333_v17 = vsel %vm2300_vm10, %v3332_v16, %v3331_v15 }
 0x5e3   :  { %v2954_v19 = vpop.f32.mrf.mxu1 }
 0x5e4   :  { %v3300_v21 = vmul.f32 0.17677669, %v2954_v19 }
 0x5e5   :  { %v4230_v23 = vpop.f32.mrf.mxu1  ;;  %v3066_v24 = vpop.f32.mrf.mxu0 }
 0x5e6   :  { %4531 = vtanh.f32 %v3300_v21  ;;  %v3301_v33 = vmul.f32 0.17677669, %v3066_v24 }
 0x5e7   :  { %v2957_v25 = vpop.f32.mrf.mxu1  ;;  %v4250_v6 = vpop.f32.mrf.mxu0 }
 0x5e8   :  { %4533 = vtanh.f32 %v3301_v33 }
 0x5e9   :  { %v4231_v55 = vpop.f32.mrf.mxu1  ;;  %v3069_v27 = vpop.f32.mrf.mxu0 }
 0x5eb   :  { %v4251_v28 = vpop.f32.mrf.mxu0 }
 0x5f3   :  { %v4532_v59 = vpop.eup %4531 }
 0x5f4   :  { %v3316_v7 = vmul.f32 10.0, %v4532_v59 }
 0x5f5   :  { %v4534_v43 = vpop.eup %4533 }
 0x5f6   :  { %v3334_v29 = vrot.slane %v3316_v7, 4  ;;  %v3317_v34 = vmul.f32 10.0, %v4534_v43 }
 0x5f8   :  { %v3335_v30 = vsel %vm2302_vm11, %v3334_v29, %v3333_v17  ;;  %v3336_v32 = vrot.slane %v3317_v34, 3 }
 0x5fa   :  { %v3337_v47 = vsel %vm2304_vm12, %v3336_v32, %v3335_v30 }
 0x623   :  { %v3178_v36 = vpop.f32.mrf.mxu1 }
 0x624   :  { %v3302_v35 = vmul.f32 0.17677669, %v3178_v36 }
 0x625   :  { %v4270_v18 = vpop.f32.mrf.mxu1  ;;  %v3290_v20 = vpop.f32.mrf.mxu0 }
 0x626   :  { %4535 = vtanh.f32 %v3302_v35  ;;  %v3303_v37 = vmul.f32 0.17677669, %v3290_v20 }
 0x627   :  { %v3181_v39 = vpop.f32.mrf.mxu1  ;;  %v4290_v40 = vpop.f32.mrf.mxu0 }
 0x628   :  { %4537 = vtanh.f32 %v3303_v37 }
 0x629   :  { %v4271_v41 = vpop.f32.mrf.mxu1  ;;  %v3293_v42 = vpop.f32.mrf.mxu0 }
 0x62b   :  { %v4291_v44 = vpop.f32.mrf.mxu0 }
 0x633   :  { %v4536_v31 = vpop.eup %4535 }
 0x634   :  { %v3318_v26 = vmul.f32 10.0, %v4536_v31 }
 0x635   :  { %v4538_v45 = vpop.eup %4537 }
 0x636   :  { %v3338_v1 = vrot.slane %v3318_v26, 2  ;;  %v3319_v46 = vmul.f32 10.0, %v4538_v45 }
 0x638   :  { %v3339_v48 = vsel %vm2306_vm13, %v3338_v1, %v3337_v47  ;;  %v3340_v49 = vrot.slane %v3319_v46, 1 }
 0x63a   :  { %v3341_v50 = vsel %vm2308_vm14, %v3340_v49, %v3339_v48 }
 0x63b   :  { %v3343_v51 = vsel %vm421_vm2, -inf, %v3341_v50 }
 0x63c   :  { %3344 = vmax.xlane.f32.xlu0 %v3343_v51 }
 0x6c5   :  { %v3345_v52 = vpop.xlane.xlu0 %3344 }
 0x6c6   :  { %v3346_v53 = vsub.f32 %v3343_v51, %v3345_v52 }
 0x6c8   :  { %v3347_v54 = vmul.f32 1.442695, %v3346_v53 }
 0x6ca   :  { %4539 = vpow2.f32 %v3347_v54 }
 0x6d7   :  { %v4540_v56 = vpop.eup %4539 }
 0x6d8   :  { %3349 = vadd.xlane.f32.xlu1 %v4540_v56 }
 0x761   :  { %v3350_v57 = vpop.xlane.xlu1 %3349 }
 0x762   :  { %4541 = vlog2.f32 %v3350_v57 }
 0x76f   :  { %v4542_v58 = vpop.eup %4541 }
 0x770   :  { %v3352_v60 = vmul.f32 0.6931472, %v4542_v58 }
 0x772   :  { %v3353_v61 = vadd.f32 %v3352_v60, %v3345_v52 }
 0x774   :  { %v3354_v22 = vsub.f32 %v3343_v51, %v3353_v61 }
 0x776   :  { %3355 = vst [vmem:[#allocation2] sm:$0xff] %v3354_v22 }
 0x777   :  { %4554 = shalt.err (!%p4551_p4)
}
 0x778   :  { %3365 = dma.vmem_to_hbm [thread:$0]  %s3363_s19, 128, %s5815_s7, [#allocation3]  }
 0x779   :  { %4563 = dma.done.wait [#allocation3], 128  }
 0x77a   :  { %4564 = vsyncadd [#allocation3], 4294967168 }
 0x77b   :  { %3369 = vsyncpa [#allocation3], 1 }

</bundles_post_ra>
